<compile_context>
chip_gen: v5e
topology: v5e:2x2
jax: 0.10.0
libtpu: 0.0.40
codegen_flags: <defaults>
</compile_context>

<pallas_src>
import numpy as np
import jax
import jax.numpy as jnp
from jax import lax
from jax.experimental import pallas as pl
from jax.experimental.pallas import tpu as pltpu

INPUT_DIM = 14     # Linear(42, 64) => input_dim * 3 == 42
SEQ_LEN = 30       # => each encoder branch ends with length 1
HIDDEN_DIM = 32
NEG_SLOPE = 0.01   # nn.LeakyReLU() default
TB = 8             # batch tile (samples per grid step)


def _conv_out_len(t_in, k, stride, pad, dil):
    return (t_in + 2 * pad - dil * (k - 1) - 1) // stride + 1


T_MID = _conv_out_len(SEQ_LEN, 3, 2, 1, 1)                      # 15
KS_B = (3, 5, 7)
DIL_B = (4, 2, 1)
TOUT_B = tuple(_conv_out_len(T_MID, k, 2, 1, d)                 # (5, 5, 6)
               for k, d in zip(KS_B, DIL_B))
PACK_W = 1 + 3 * INPUT_DIM + 64                                 # 107 packed columns


# ------------------------- constant builders (wrapper) -------------------------
def _make_sel_T(t_in, k, stride, pad, dil, tb):
    """S[kk, t_out*tb+n, t_in*tb+n] = 1 iff padded position maps in-range (0/1 gather)."""
    t_out = _conv_out_len(t_in, k, stride, pad, dil)
    s = np.zeros((k, t_out * tb, t_in * tb), np.float32)
    for kk in range(k):
        for t in range(t_out):
            idx = t * stride + kk * dil - pad
            if 0 <= idx < t_in:
                rows = t * tb + np.arange(tb)
                cols = idx * tb + np.arange(tb)
                s[kk, rows, cols] = 1.0
    return s


def _conv_a_weight_T(p):
    # (42 in = k*14+ci, 42 out = enc*14+co): fused first conv of all 3 encoders.
    cols = []
    for e in (1, 2, 3):
        w = p[f"w{e}a"]                                          # (co, ci, k)
        cols.append(jnp.transpose(w, (2, 1, 0)).reshape(3 * INPUT_DIM, INPUT_DIM))
    return jnp.concatenate(cols, axis=1)


def _conv_b_weight_T(p, e):
    # rows: H_a channel index (enc*14+ci); cols: k*16+co (co padded 14->16).
    w = p[f"w{e}b"]                                              # (co, ci, K)
    k = w.shape[-1]
    wt = jnp.transpose(w, (2, 0, 1))                             # (K, co, ci)
    wt = jnp.pad(wt, ((0, 0), (0, 2), (0, 0)))                   # (K, 16, ci)
    blk = jnp.transpose(wt, (2, 0, 1)).reshape(INPUT_DIM, k * 16)
    return jnp.pad(blk, (((e - 1) * INPUT_DIM, (3 - e) * INPUT_DIM), (0, 0)))


def _adapter_weight_T(wad):
    # rows: enc*16 + channel (padded), cols: 64; matches torch flatten order c*3+enc.
    blocks = []
    for e0 in range(3):
        blocks.append(jnp.pad(wad[:, e0::3].T, ((0, 2), (0, 0))))
    return jnp.concatenate(blocks, axis=0)                       # (48, 64)


# ----------------------------- Pallas kernel ---------------------------------
def _student_kernel(x_ref, s1_ref, s2_ref, s3_ref,
                    wa_ref, ba_ref, wb1_ref, wb2_ref, wb3_ref, bb_ref,
                    wad_ref, bad_ref, wr1_ref, br1_ref, wr2_ref, br2_ref,
                    out_ref):
    f32, bf16 = jnp.float32, jnp.bfloat16

    def leaky(v):
        return jnp.where(v > 0, v, NEG_SLOPE * v)

    # ---- stage A: fused first conv of all 3 encoders, whole tile, one matmul.
    h_a = jnp.dot(x_ref[...], wa_ref[...], preferred_element_type=f32) + ba_ref[...]
    h_a = leaky(h_a).astype(bf16)                                # (15*TB, 42)

    # ---- stage B: per-tap channel mix (1 matmul / encoder) + selection gathers.
    feas = []
    for e, (wb_ref, s_ref) in enumerate(zip((wb1_ref, wb2_ref, wb3_ref),
                                            (s1_ref, s2_ref, s3_ref))):
        n_tap, t_out = KS_B[e], TOUT_B[e]
        y = jnp.dot(h_a, wb_ref[...], preferred_element_type=f32).astype(bf16)  # (15*TB, K*16)
        acc = jnp.dot(s_ref[0], y[:, 0:16], preferred_element_type=f32)         # (t_out*TB, 16)
        for k in range(1, n_tap):
            acc = acc + jnp.dot(s_ref[k], y[:, k * 16:(k + 1) * 16],
                                preferred_element_type=f32)
        hb = leaky(acc + bb_ref[e:e + 1, :])                                     # (t_out*TB, 16)
        # MaxPool1d over the full remaining length: max over aligned sublane blocks.
        fea = hb[0:TB, :]
        for t in range(1, t_out):
            fea = jnp.maximum(fea, hb[t * TB:(t + 1) * TB, :])
        feas.append(fea)                                                         # (TB, 16) f32

    f_t = jnp.concatenate(feas, axis=1).astype(bf16)             # (TB, 48)

    # ---- adapter + regressor, batched across the tile (batch on sublanes).
    hint = jnp.dot(f_t, wad_ref[...], preferred_element_type=f32) + bad_ref[...]   # (TB, 64)
    h1 = jnp.dot(hint.astype(bf16), wr1_ref[...], preferred_element_type=f32) + br1_ref[...]
    h1 = jnp.maximum(h1, 0.0)                                                       # (TB, 32)
    # TODO(synk): nn.Dropout is identity at inference; train-mode RNG dropout not implemented.
    pred = jnp.sum(h1 * wr2_ref[...], axis=-1, keepdims=True) + br2_ref[...]        # (TB, 1)

    # ---- pack everything into one lane-dense (TB, 128) output block.
    out_ref[...] = jnp.concatenate(
        [pred,
         feas[0][:, :INPUT_DIM], feas[1][:, :INPUT_DIM], feas[2][:, :INPUT_DIM],
         hint,
         jnp.zeros((TB, 128 - PACK_W), f32)],
        axis=1)


# ------------------------------- wrapper --------------------------------------
@jax.jit
def cnn_rul_student_stack_forward(x, p):
    n, c, l = x.shape
    assert c == INPUT_DIM and l == SEQ_LEN
    f32, bf16 = jnp.float32, jnp.bfloat16
    num_tiles = -(-n // TB)
    n_pad = num_tiles * TB

    # conv-a im2col of the raw input (pure gather, done once in XLA):
    # rows = tile*15*TB + t*TB + n_local, cols = k*14 + cin.
    xpad = jnp.pad(x.astype(f32), ((0, n_pad - n), (0, 0), (1, 1)))        # (n_pad, 14, 32)
    gidx = 2 * jnp.arange(T_MID)[None, :] + jnp.arange(3)[:, None]         # (3, 15): 2t + k
    xw = xpad[:, :, gidx]                                                  # (n_pad, 14, 3, 15)
    xw = xw.reshape(num_tiles, TB, INPUT_DIM, 3, T_MID)
    x_colT = jnp.transpose(xw, (0, 4, 1, 3, 2)).reshape(
        num_tiles * T_MID * TB, 3 * INPUT_DIM).astype(bf16)

    # weights / biases (bf16 matmul operands, f32 biases & element-wise)
    wa_T = _conv_a_weight_T(p).astype(bf16)                                # (42, 42)
    ba_row = jnp.concatenate([p["b1a"], p["b2a"], p["b3a"]])[None, :].astype(f32)
    wb1, wb2, wb3 = (_conv_b_weight_T(p, e).astype(bf16) for e in (1, 2, 3))
    bb = jnp.stack([jnp.pad(p[f"b{e}b"], (0, 2)) for e in (1, 2, 3)]).astype(f32)  # (3, 16)
    wad_T = _adapter_weight_T(p["wad"]).astype(bf16)                       # (48, 64)
    bad_row = p["bad"][None, :].astype(f32)
    wr1_T = p["wr1"].T.astype(bf16)                                        # (64, 32)
    br1_row = p["br1"][None, :].astype(f32)
    wr2_row = p["wr2"].astype(f32)                                         # (1, 32)
    br2 = p["br2"][None, :].astype(f32)                                    # (1, 1)

    # 0/1 selection matrices for the second convs (stride/pad/dilation + batch tiling)
    s1 = jnp.asarray(_make_sel_T(T_MID, 3, 2, 1, 4, TB), bf16)             # (3, 5*TB, 15*TB)
    s2 = jnp.asarray(_make_sel_T(T_MID, 5, 2, 1, 2, TB), bf16)             # (5, 5*TB, 15*TB)
    s3 = jnp.asarray(_make_sel_T(T_MID, 7, 2, 1, 1, TB), bf16)             # (7, 6*TB, 15*TB)

    inputs = (x_colT, s1, s2, s3, wa_T, ba_row, wb1, wb2, wb3, bb,
              wad_T, bad_row, wr1_T, br1_row, wr2_row, br2)

    def full_spec(a):
        return pl.BlockSpec(a.shape, lambda i, nd=a.ndim: (0,) * nd)

    in_specs = [pl.BlockSpec((T_MID * TB, 3 * INPUT_DIM), lambda i: (i, 0))]
    in_specs += [full_spec(a) for a in inputs[1:]]

    out = pl.pallas_call(
        _student_kernel,
        grid=(num_tiles,),
        in_specs=in_specs,
        out_specs=pl.BlockSpec((TB, 128), lambda i: (i, 0)),
        out_shape=jax.ShapeDtypeStruct((n_pad, 128), f32),
        compiler_params=pltpu.CompilerParams(dimension_semantics=("parallel",)),
    )(*inputs)

    # unpack the lane-dense slab; reorder features into torch's channel-major interleave.
    out = out[:n]
    pred = out[:, 0]
    features = jnp.transpose(out[:, 1:1 + 3 * INPUT_DIM].reshape(n, 3, INPUT_DIM),
                             (0, 2, 1)).reshape(n, 3 * INPUT_DIM)          # (N, 42)
    hint = out[:, 1 + 3 * INPUT_DIM:PACK_W]                                # (N, 64)
    return pred, features, hint


# -------------------------- params & pure-JAX reference -----------------------
def init_params(key):
    keys = jax.random.split(key, 32)
    idx = [0]

    def nk():
        k = keys[idx[0]]
        idx[0] += 1
        return k

    def w(shape, scale=0.15):
        return scale * jax.random.normal(nk(), shape, jnp.float32)

    c = INPUT_DIM
    p = {}
    for name, ksz in [("w1a", 3), ("w1b", 3), ("w2a", 3), ("w2b", 5), ("w3a", 3), ("w3b", 7)]:
        p[name] = w((c, c, ksz))
        p["b" + name[1:]] = w((c,), 0.05)
    p["wad"] = w((64, 42));            p["bad"] = w((64,), 0.05)
    p["wr1"] = w((HIDDEN_DIM, 64));    p["br1"] = w((HIDDEN_DIM,), 0.05)
    p["wr2"] = w((1, HIDDEN_DIM));     p["br2"] = w((1,), 0.05)
    return p


def _conv1d_ref(x, w, b, stride, pad, dil):
    n, cin, t = x.shape
    cout, _, k = w.shape
    xp = jnp.pad(x, ((0, 0), (0, 0), (pad, pad)))
    t_out = _conv_out_len(t, k, stride, pad, dil)
    cols = []
    for tt in range(t_out):
        win = lax.slice_in_dim(xp, tt * stride, tt * stride + dil * (k - 1) + 1,
                               stride=dil, axis=2)                     # (N, Cin, K)
        cols.append(jnp.einsum("nck,ock->no", win, w))
    return jnp.stack(cols, axis=-1) + b[None, :, None]


def _forward_ref(x, p):
    def leaky(v):
        return jnp.where(v > 0, v, NEG_SLOPE * v)

    def enc(wa, ba, wb, bb, k2_dil):
        h = leaky(_conv1d_ref(x, wa, ba, 2, 1, 1))
        h = leaky(_conv1d_ref(h, wb, bb, 2, 1, k2_dil))
        return jnp.max(h, axis=-1, keepdims=True)   # MaxPool over full remaining length

    f1 = enc(p["w1a"], p["b1a"], p["w1b"], p["b1b"], 4)
    f2 = enc(p["w2a"], p["b2a"], p["w2b"], p["b2b"], 2)
    f3 = enc(p["w3a"], p["b3a"], p["w3b"], p["b3b"], 1)
    features = jnp.concatenate([f1, f2, f3], axis=2).reshape(x.shape[0], -1)
    hint = features @ p["wad"].T + p["bad"]
    h = jax.nn.relu(hint @ p["wr1"].T + p["br1"])
    pred = (h @ p["wr2"].T + p["br2"]).squeeze()
    return pred, features, hint


# ---------------------------------- main ---------------------------------------
if __name__ == "__main__":
    key = jax.random.PRNGKey(0)
    kx, kp = jax.random.split(key)
    params = init_params(kp)

    for n in (2, 19):   # n=2: single tile; n=19: multi-tile grid + batch padding
        x = jax.random.normal(jax.random.fold_in(kx, n),
                              (n, INPUT_DIM, SEQ_LEN), jnp.float32)
        pred, features, hint = cnn_rul_student_stack_forward(x, params)
        jax.block_until_ready((pred, features, hint))

        with jax.default_matmul_precision("highest"):
            pred_r, feat_r, hint_r = _forward_ref(x, params)
        jax.block_until_ready((pred_r, feat_r, hint_r))

        assert pred.shape == (n,) and features.shape == (n, 42) and hint.shape == (n, 64)
        # bf16 MXU operands with f32 accumulation vs exact-f32 reference.
        np.testing.assert_allclose(np.asarray(features), np.asarray(feat_r), rtol=2e-2, atol=1e-2)
        np.testing.assert_allclose(np.asarray(hint), np.asarray(hint_r), rtol=2e-2, atol=1e-2)
        np.testing.assert_allclose(np.asarray(pred), np.asarray(pred_r), rtol=2e-2, atol=1e-2)

    print("KERNEL_OK")
</pallas_src>

<mosaic_0001>
module attributes {stable_mosaic.version = 11 : i64} {
  func.func @_student_kernel(%arg0: i32, %arg1: memref<120x42xbf16, #tpu.memory_space<vmem>>, %arg2: memref<3x40x120xbf16, #tpu.memory_space<vmem>>, %arg3: memref<5x40x120xbf16, #tpu.memory_space<vmem>>, %arg4: memref<7x48x120xbf16, #tpu.memory_space<vmem>>, %arg5: memref<42x42xbf16, #tpu.memory_space<vmem>>, %arg6: memref<1x42xf32, #tpu.memory_space<vmem>>, %arg7: memref<42x48xbf16, #tpu.memory_space<vmem>>, %arg8: memref<42x80xbf16, #tpu.memory_space<vmem>>, %arg9: memref<42x112xbf16, #tpu.memory_space<vmem>>, %arg10: memref<3x16xf32, #tpu.memory_space<vmem>>, %arg11: memref<48x64xbf16, #tpu.memory_space<vmem>>, %arg12: memref<1x64xf32, #tpu.memory_space<vmem>>, %arg13: memref<64x32xbf16, #tpu.memory_space<vmem>>, %arg14: memref<1x32xf32, #tpu.memory_space<vmem>>, %arg15: memref<1x32xf32, #tpu.memory_space<vmem>>, %arg16: memref<1x1xf32, #tpu.memory_space<vmem>>, %arg17: memref<8x128xf32, #tpu.memory_space<vmem>>) attributes {dimension_semantics = [#tpu.dimension_semantics<parallel>], iteration_bounds = array<i64: 1>, scalar_prefetch = 0 : i64, scratch_operands = 0 : i64, tpu.core_type = #tpu.core_type<tc>, window_params = [{transform_indices = @transform_0, window_bounds = array<i64: 120, 42>}, {pipeline_mode = #tpu.pipeline_mode<synchronous>, transform_indices = @transform_1, window_bounds = array<i64: 3, 40, 120>}, {pipeline_mode = #tpu.pipeline_mode<synchronous>, transform_indices = @transform_2, window_bounds = array<i64: 5, 40, 120>}, {pipeline_mode = #tpu.pipeline_mode<synchronous>, transform_indices = @transform_3, window_bounds = array<i64: 7, 48, 120>}, {pipeline_mode = #tpu.pipeline_mode<synchronous>, transform_indices = @transform_4, window_bounds = array<i64: 42, 42>}, {pipeline_mode = #tpu.pipeline_mode<synchronous>, transform_indices = @transform_5, window_bounds = array<i64: 1, 42>}, {pipeline_mode = #tpu.pipeline_mode<synchronous>, transform_indices = @transform_6, window_bounds = array<i64: 42, 48>}, {pipeline_mode = #tpu.pipeline_mode<synchronous>, transform_indices = @transform_7, window_bounds = array<i64: 42, 80>}, {pipeline_mode = #tpu.pipeline_mode<synchronous>, transform_indices = @transform_8, window_bounds = array<i64: 42, 112>}, {pipeline_mode = #tpu.pipeline_mode<synchronous>, transform_indices = @transform_9, window_bounds = array<i64: 3, 16>}, {pipeline_mode = #tpu.pipeline_mode<synchronous>, transform_indices = @transform_10, window_bounds = array<i64: 48, 64>}, {pipeline_mode = #tpu.pipeline_mode<synchronous>, transform_indices = @transform_11, window_bounds = array<i64: 1, 64>}, {pipeline_mode = #tpu.pipeline_mode<synchronous>, transform_indices = @transform_12, window_bounds = array<i64: 64, 32>}, {pipeline_mode = #tpu.pipeline_mode<synchronous>, transform_indices = @transform_13, window_bounds = array<i64: 1, 32>}, {pipeline_mode = #tpu.pipeline_mode<synchronous>, transform_indices = @transform_14, window_bounds = array<i64: 1, 32>}, {pipeline_mode = #tpu.pipeline_mode<synchronous>, transform_indices = @transform_15, window_bounds = array<i64: 1, 1>}, {transform_indices = @transform_16, window_bounds = array<i64: 8, 128>}]} {
    %c0 = arith.constant 0 : index
    %c0_0 = arith.constant 0 : index
    %0 = vector.load %arg1[%c0, %c0_0] : memref<120x42xbf16, #tpu.memory_space<vmem>>, vector<120x42xbf16>
    %c0_1 = arith.constant 0 : index
    %c0_2 = arith.constant 0 : index
    %1 = vector.load %arg5[%c0_1, %c0_2] : memref<42x42xbf16, #tpu.memory_space<vmem>>, vector<42x42xbf16>
    %cst = arith.constant dense<0.000000e+00> : vector<120x42xf32>
    %2 = tpu.matmul %0, %1, %cst {dimension_numbers = #tpu.dot_dimension_numbers<[1], [0], [0], [1], [0, 0, 1, 1], [], []>} : vector<120x42xbf16>, vector<42x42xbf16>, vector<120x42xf32> -> vector<120x42xf32>
    %c0_3 = arith.constant 0 : index
    %c0_4 = arith.constant 0 : index
    %3 = vector.load %arg6[%c0_3, %c0_4] : memref<1x42xf32, #tpu.memory_space<vmem>>, vector<1x42xf32>
    %4 = vector.broadcast %3 : vector<1x42xf32> to vector<120x42xf32>
    %5 = arith.addf %2, %4 : vector<120x42xf32>
    %cst_5 = arith.constant 0.000000e+00 : f32
    %6 = vector.broadcast %cst_5 : f32 to vector<120x42xf32>
    %7 = arith.cmpf ogt, %5, %6 : vector<120x42xf32>
    %cst_6 = arith.constant 0.00999999977 : f32
    %8 = vector.broadcast %cst_6 : f32 to vector<120x42xf32>
    %9 = arith.mulf %8, %5 : vector<120x42xf32>
    %10 = arith.select %7, %5, %9 : vector<120x42xi1>, vector<120x42xf32>
    %11 = arith.truncf %10 : vector<120x42xf32> to vector<120x42xbf16>
    %c0_7 = arith.constant 0 : index
    %c0_8 = arith.constant 0 : index
    %12 = vector.load %arg7[%c0_7, %c0_8] : memref<42x48xbf16, #tpu.memory_space<vmem>>, vector<42x48xbf16>
    %cst_9 = arith.constant dense<0.000000e+00> : vector<120x48xf32>
    %13 = tpu.matmul %11, %12, %cst_9 {dimension_numbers = #tpu.dot_dimension_numbers<[1], [0], [0], [1], [0, 0, 1, 1], [], []>} : vector<120x42xbf16>, vector<42x48xbf16>, vector<120x48xf32> -> vector<120x48xf32>
    %14 = arith.truncf %13 : vector<120x48xf32> to vector<120x48xbf16>
    %c0_10 = arith.constant 0 : index
    %c0_11 = arith.constant 0 : index
    %c0_12 = arith.constant 0 : index
    %15 = vector.load %arg2[%c0_10, %c0_11, %c0_12] : memref<3x40x120xbf16, #tpu.memory_space<vmem>>, vector<1x40x120xbf16>
    %16 = vector.shape_cast %15 : vector<1x40x120xbf16> to vector<40x120xbf16>
    %17 = vector.extract_strided_slice %14 {offsets = [0, 0], sizes = [120, 16], strides = [1, 1]} : vector<120x48xbf16> to vector<120x16xbf16>
    %cst_13 = arith.constant dense<0.000000e+00> : vector<40x16xf32>
    %18 = tpu.matmul %16, %17, %cst_13 {dimension_numbers = #tpu.dot_dimension_numbers<[1], [0], [0], [1], [0, 0, 1, 1], [], []>} : vector<40x120xbf16>, vector<120x16xbf16>, vector<40x16xf32> -> vector<40x16xf32>
    %c1 = arith.constant 1 : index
    %c0_14 = arith.constant 0 : index
    %c0_15 = arith.constant 0 : index
    %19 = vector.load %arg2[%c1, %c0_14, %c0_15] : memref<3x40x120xbf16, #tpu.memory_space<vmem>>, vector<1x40x120xbf16>
    %20 = vector.shape_cast %19 : vector<1x40x120xbf16> to vector<40x120xbf16>
    %21 = vector.extract_strided_slice %14 {offsets = [0, 16], sizes = [120, 16], strides = [1, 1]} : vector<120x48xbf16> to vector<120x16xbf16>
    %cst_16 = arith.constant dense<0.000000e+00> : vector<40x16xf32>
    %22 = tpu.matmul %20, %21, %cst_16 {dimension_numbers = #tpu.dot_dimension_numbers<[1], [0], [0], [1], [0, 0, 1, 1], [], []>} : vector<40x120xbf16>, vector<120x16xbf16>, vector<40x16xf32> -> vector<40x16xf32>
    %23 = arith.addf %18, %22 : vector<40x16xf32>
    %c2 = arith.constant 2 : index
    %c0_17 = arith.constant 0 : index
    %c0_18 = arith.constant 0 : index
    %24 = vector.load %arg2[%c2, %c0_17, %c0_18] : memref<3x40x120xbf16, #tpu.memory_space<vmem>>, vector<1x40x120xbf16>
    %25 = vector.shape_cast %24 : vector<1x40x120xbf16> to vector<40x120xbf16>
    %26 = vector.extract_strided_slice %14 {offsets = [0, 32], sizes = [120, 16], strides = [1, 1]} : vector<120x48xbf16> to vector<120x16xbf16>
    %cst_19 = arith.constant dense<0.000000e+00> : vector<40x16xf32>
    %27 = tpu.matmul %25, %26, %cst_19 {dimension_numbers = #tpu.dot_dimension_numbers<[1], [0], [0], [1], [0, 0, 1, 1], [], []>} : vector<40x120xbf16>, vector<120x16xbf16>, vector<40x16xf32> -> vector<40x16xf32>
    %28 = arith.addf %23, %27 : vector<40x16xf32>
    %c0_20 = arith.constant 0 : index
    %c0_21 = arith.constant 0 : index
    %29 = vector.load %arg10[%c0_20, %c0_21] : memref<3x16xf32, #tpu.memory_space<vmem>>, vector<1x16xf32>
    %30 = vector.broadcast %29 : vector<1x16xf32> to vector<40x16xf32>
    %31 = arith.addf %28, %30 : vector<40x16xf32>
    %cst_22 = arith.constant 0.000000e+00 : f32
    %32 = vector.broadcast %cst_22 : f32 to vector<40x16xf32>
    %33 = arith.cmpf ogt, %31, %32 : vector<40x16xf32>
    %cst_23 = arith.constant 0.00999999977 : f32
    %34 = vector.broadcast %cst_23 : f32 to vector<40x16xf32>
    %35 = arith.mulf %34, %31 : vector<40x16xf32>
    %36 = arith.select %33, %31, %35 : vector<40x16xi1>, vector<40x16xf32>
    %37 = vector.extract_strided_slice %36 {offsets = [0, 0], sizes = [8, 16], strides = [1, 1]} : vector<40x16xf32> to vector<8x16xf32>
    %38 = vector.extract_strided_slice %36 {offsets = [8, 0], sizes = [8, 16], strides = [1, 1]} : vector<40x16xf32> to vector<8x16xf32>
    %39 = arith.maximumf %37, %38 : vector<8x16xf32>
    %40 = vector.extract_strided_slice %36 {offsets = [16, 0], sizes = [8, 16], strides = [1, 1]} : vector<40x16xf32> to vector<8x16xf32>
    %41 = arith.maximumf %39, %40 : vector<8x16xf32>
    %42 = vector.extract_strided_slice %36 {offsets = [24, 0], sizes = [8, 16], strides = [1, 1]} : vector<40x16xf32> to vector<8x16xf32>
    %43 = arith.maximumf %41, %42 : vector<8x16xf32>
    %44 = vector.extract_strided_slice %36 {offsets = [32, 0], sizes = [8, 16], strides = [1, 1]} : vector<40x16xf32> to vector<8x16xf32>
    %45 = arith.maximumf %43, %44 : vector<8x16xf32>
    %c0_24 = arith.constant 0 : index
    %c0_25 = arith.constant 0 : index
    %46 = vector.load %arg8[%c0_24, %c0_25] : memref<42x80xbf16, #tpu.memory_space<vmem>>, vector<42x80xbf16>
    %cst_26 = arith.constant dense<0.000000e+00> : vector<120x80xf32>
    %47 = tpu.matmul %11, %46, %cst_26 {dimension_numbers = #tpu.dot_dimension_numbers<[1], [0], [0], [1], [0, 0, 1, 1], [], []>} : vector<120x42xbf16>, vector<42x80xbf16>, vector<120x80xf32> -> vector<120x80xf32>
    %48 = arith.truncf %47 : vector<120x80xf32> to vector<120x80xbf16>
    %c0_27 = arith.constant 0 : index
    %c0_28 = arith.constant 0 : index
    %c0_29 = arith.constant 0 : index
    %49 = vector.load %arg3[%c0_27, %c0_28, %c0_29] : memref<5x40x120xbf16, #tpu.memory_space<vmem>>, vector<1x40x120xbf16>
    %50 = vector.shape_cast %49 : vector<1x40x120xbf16> to vector<40x120xbf16>
    %51 = vector.extract_strided_slice %48 {offsets = [0, 0], sizes = [120, 16], strides = [1, 1]} : vector<120x80xbf16> to vector<120x16xbf16>
    %cst_30 = arith.constant dense<0.000000e+00> : vector<40x16xf32>
    %52 = tpu.matmul %50, %51, %cst_30 {dimension_numbers = #tpu.dot_dimension_numbers<[1], [0], [0], [1], [0, 0, 1, 1], [], []>} : vector<40x120xbf16>, vector<120x16xbf16>, vector<40x16xf32> -> vector<40x16xf32>
    %c1_31 = arith.constant 1 : index
    %c0_32 = arith.constant 0 : index
    %c0_33 = arith.constant 0 : index
    %53 = vector.load %arg3[%c1_31, %c0_32, %c0_33] : memref<5x40x120xbf16, #tpu.memory_space<vmem>>, vector<1x40x120xbf16>
    %54 = vector.shape_cast %53 : vector<1x40x120xbf16> to vector<40x120xbf16>
    %55 = vector.extract_strided_slice %48 {offsets = [0, 16], sizes = [120, 16], strides = [1, 1]} : vector<120x80xbf16> to vector<120x16xbf16>
    %cst_34 = arith.constant dense<0.000000e+00> : vector<40x16xf32>
    %56 = tpu.matmul %54, %55, %cst_34 {dimension_numbers = #tpu.dot_dimension_numbers<[1], [0], [0], [1], [0, 0, 1, 1], [], []>} : vector<40x120xbf16>, vector<120x16xbf16>, vector<40x16xf32> -> vector<40x16xf32>
    %57 = arith.addf %52, %56 : vector<40x16xf32>
    %c2_35 = arith.constant 2 : index
    %c0_36 = arith.constant 0 : index
    %c0_37 = arith.constant 0 : index
    %58 = vector.load %arg3[%c2_35, %c0_36, %c0_37] : memref<5x40x120xbf16, #tpu.memory_space<vmem>>, vector<1x40x120xbf16>
    %59 = vector.shape_cast %58 : vector<1x40x120xbf16> to vector<40x120xbf16>
    %60 = vector.extract_strided_slice %48 {offsets = [0, 32], sizes = [120, 16], strides = [1, 1]} : vector<120x80xbf16> to vector<120x16xbf16>
    %cst_38 = arith.constant dense<0.000000e+00> : vector<40x16xf32>
    %61 = tpu.matmul %59, %60, %cst_38 {dimension_numbers = #tpu.dot_dimension_numbers<[1], [0], [0], [1], [0, 0, 1, 1], [], []>} : vector<40x120xbf16>, vector<120x16xbf16>, vector<40x16xf32> -> vector<40x16xf32>
    %62 = arith.addf %57, %61 : vector<40x16xf32>
    %c3 = arith.constant 3 : index
    %c0_39 = arith.constant 0 : index
    %c0_40 = arith.constant 0 : index
    %63 = vector.load %arg3[%c3, %c0_39, %c0_40] : memref<5x40x120xbf16, #tpu.memory_space<vmem>>, vector<1x40x120xbf16>
    %64 = vector.shape_cast %63 : vector<1x40x120xbf16> to vector<40x120xbf16>
    %65 = vector.extract_strided_slice %48 {offsets = [0, 48], sizes = [120, 16], strides = [1, 1]} : vector<120x80xbf16> to vector<120x16xbf16>
    %cst_41 = arith.constant dense<0.000000e+00> : vector<40x16xf32>
    %66 = tpu.matmul %64, %65, %cst_41 {dimension_numbers = #tpu.dot_dimension_numbers<[1], [0], [0], [1], [0, 0, 1, 1], [], []>} : vector<40x120xbf16>, vector<120x16xbf16>, vector<40x16xf32> -> vector<40x16xf32>
    %67 = arith.addf %62, %66 : vector<40x16xf32>
    %c4 = arith.constant 4 : index
    %c0_42 = arith.constant 0 : index
    %c0_43 = arith.constant 0 : index
    %68 = vector.load %arg3[%c4, %c0_42, %c0_43] : memref<5x40x120xbf16, #tpu.memory_space<vmem>>, vector<1x40x120xbf16>
    %69 = vector.shape_cast %68 : vector<1x40x120xbf16> to vector<40x120xbf16>
    %70 = vector.extract_strided_slice %48 {offsets = [0, 64], sizes = [120, 16], strides = [1, 1]} : vector<120x80xbf16> to vector<120x16xbf16>
    %cst_44 = arith.constant dense<0.000000e+00> : vector<40x16xf32>
    %71 = tpu.matmul %69, %70, %cst_44 {dimension_numbers = #tpu.dot_dimension_numbers<[1], [0], [0], [1], [0, 0, 1, 1], [], []>} : vector<40x120xbf16>, vector<120x16xbf16>, vector<40x16xf32> -> vector<40x16xf32>
    %72 = arith.addf %67, %71 : vector<40x16xf32>
    %c1_45 = arith.constant 1 : index
    %c0_46 = arith.constant 0 : index
    %73 = vector.load %arg10[%c1_45, %c0_46] : memref<3x16xf32, #tpu.memory_space<vmem>>, vector<1x16xf32>
    %74 = vector.broadcast %73 : vector<1x16xf32> to vector<40x16xf32>
    %75 = arith.addf %72, %74 : vector<40x16xf32>
    %cst_47 = arith.constant 0.000000e+00 : f32
    %76 = vector.broadcast %cst_47 : f32 to vector<40x16xf32>
    %77 = arith.cmpf ogt, %75, %76 : vector<40x16xf32>
    %cst_48 = arith.constant 0.00999999977 : f32
    %78 = vector.broadcast %cst_48 : f32 to vector<40x16xf32>
    %79 = arith.mulf %78, %75 : vector<40x16xf32>
    %80 = arith.select %77, %75, %79 : vector<40x16xi1>, vector<40x16xf32>
    %81 = vector.extract_strided_slice %80 {offsets = [0, 0], sizes = [8, 16], strides = [1, 1]} : vector<40x16xf32> to vector<8x16xf32>
    %82 = vector.extract_strided_slice %80 {offsets = [8, 0], sizes = [8, 16], strides = [1, 1]} : vector<40x16xf32> to vector<8x16xf32>
    %83 = arith.maximumf %81, %82 : vector<8x16xf32>
    %84 = vector.extract_strided_slice %80 {offsets = [16, 0], sizes = [8, 16], strides = [1, 1]} : vector<40x16xf32> to vector<8x16xf32>
    %85 = arith.maximumf %83, %84 : vector<8x16xf32>
    %86 = vector.extract_strided_slice %80 {offsets = [24, 0], sizes = [8, 16], strides = [1, 1]} : vector<40x16xf32> to vector<8x16xf32>
    %87 = arith.maximumf %85, %86 : vector<8x16xf32>
    %88 = vector.extract_strided_slice %80 {offsets = [32, 0], sizes = [8, 16], strides = [1, 1]} : vector<40x16xf32> to vector<8x16xf32>
    %89 = arith.maximumf %87, %88 : vector<8x16xf32>
    %c0_49 = arith.constant 0 : index
    %c0_50 = arith.constant 0 : index
    %90 = vector.load %arg9[%c0_49, %c0_50] : memref<42x112xbf16, #tpu.memory_space<vmem>>, vector<42x112xbf16>
    %cst_51 = arith.constant dense<0.000000e+00> : vector<120x112xf32>
    %91 = tpu.matmul %11, %90, %cst_51 {dimension_numbers = #tpu.dot_dimension_numbers<[1], [0], [0], [1], [0, 0, 1, 1], [], []>} : vector<120x42xbf16>, vector<42x112xbf16>, vector<120x112xf32> -> vector<120x112xf32>
    %92 = arith.truncf %91 : vector<120x112xf32> to vector<120x112xbf16>
    %c0_52 = arith.constant 0 : index
    %c0_53 = arith.constant 0 : index
    %c0_54 = arith.constant 0 : index
    %93 = vector.load %arg4[%c0_52, %c0_53, %c0_54] : memref<7x48x120xbf16, #tpu.memory_space<vmem>>, vector<1x48x120xbf16>
    %94 = vector.shape_cast %93 : vector<1x48x120xbf16> to vector<48x120xbf16>
    %95 = vector.extract_strided_slice %92 {offsets = [0, 0], sizes = [120, 16], strides = [1, 1]} : vector<120x112xbf16> to vector<120x16xbf16>
    %cst_55 = arith.constant dense<0.000000e+00> : vector<48x16xf32>
    %96 = tpu.matmul %94, %95, %cst_55 {dimension_numbers = #tpu.dot_dimension_numbers<[1], [0], [0], [1], [0, 0, 1, 1], [], []>} : vector<48x120xbf16>, vector<120x16xbf16>, vector<48x16xf32> -> vector<48x16xf32>
    %c1_56 = arith.constant 1 : index
    %c0_57 = arith.constant 0 : index
    %c0_58 = arith.constant 0 : index
    %97 = vector.load %arg4[%c1_56, %c0_57, %c0_58] : memref<7x48x120xbf16, #tpu.memory_space<vmem>>, vector<1x48x120xbf16>
    %98 = vector.shape_cast %97 : vector<1x48x120xbf16> to vector<48x120xbf16>
    %99 = vector.extract_strided_slice %92 {offsets = [0, 16], sizes = [120, 16], strides = [1, 1]} : vector<120x112xbf16> to vector<120x16xbf16>
    %cst_59 = arith.constant dense<0.000000e+00> : vector<48x16xf32>
    %100 = tpu.matmul %98, %99, %cst_59 {dimension_numbers = #tpu.dot_dimension_numbers<[1], [0], [0], [1], [0, 0, 1, 1], [], []>} : vector<48x120xbf16>, vector<120x16xbf16>, vector<48x16xf32> -> vector<48x16xf32>
    %101 = arith.addf %96, %100 : vector<48x16xf32>
    %c2_60 = arith.constant 2 : index
    %c0_61 = arith.constant 0 : index
    %c0_62 = arith.constant 0 : index
    %102 = vector.load %arg4[%c2_60, %c0_61, %c0_62] : memref<7x48x120xbf16, #tpu.memory_space<vmem>>, vector<1x48x120xbf16>
    %103 = vector.shape_cast %102 : vector<1x48x120xbf16> to vector<48x120xbf16>
    %104 = vector.extract_strided_slice %92 {offsets = [0, 32], sizes = [120, 16], strides = [1, 1]} : vector<120x112xbf16> to vector<120x16xbf16>
    %cst_63 = arith.constant dense<0.000000e+00> : vector<48x16xf32>
    %105 = tpu.matmul %103, %104, %cst_63 {dimension_numbers = #tpu.dot_dimension_numbers<[1], [0], [0], [1], [0, 0, 1, 1], [], []>} : vector<48x120xbf16>, vector<120x16xbf16>, vector<48x16xf32> -> vector<48x16xf32>
    %106 = arith.addf %101, %105 : vector<48x16xf32>
    %c3_64 = arith.constant 3 : index
    %c0_65 = arith.constant 0 : index
    %c0_66 = arith.constant 0 : index
    %107 = vector.load %arg4[%c3_64, %c0_65, %c0_66] : memref<7x48x120xbf16, #tpu.memory_space<vmem>>, vector<1x48x120xbf16>
    %108 = vector.shape_cast %107 : vector<1x48x120xbf16> to vector<48x120xbf16>
    %109 = vector.extract_strided_slice %92 {offsets = [0, 48], sizes = [120, 16], strides = [1, 1]} : vector<120x112xbf16> to vector<120x16xbf16>
    %cst_67 = arith.constant dense<0.000000e+00> : vector<48x16xf32>
    %110 = tpu.matmul %108, %109, %cst_67 {dimension_numbers = #tpu.dot_dimension_numbers<[1], [0], [0], [1], [0, 0, 1, 1], [], []>} : vector<48x120xbf16>, vector<120x16xbf16>, vector<48x16xf32> -> vector<48x16xf32>
    %111 = arith.addf %106, %110 : vector<48x16xf32>
    %c4_68 = arith.constant 4 : index
    %c0_69 = arith.constant 0 : index
    %c0_70 = arith.constant 0 : index
    %112 = vector.load %arg4[%c4_68, %c0_69, %c0_70] : memref<7x48x120xbf16, #tpu.memory_space<vmem>>, vector<1x48x120xbf16>
    %113 = vector.shape_cast %112 : vector<1x48x120xbf16> to vector<48x120xbf16>
    %114 = vector.extract_strided_slice %92 {offsets = [0, 64], sizes = [120, 16], strides = [1, 1]} : vector<120x112xbf16> to vector<120x16xbf16>
    %cst_71 = arith.constant dense<0.000000e+00> : vector<48x16xf32>
    %115 = tpu.matmul %113, %114, %cst_71 {dimension_numbers = #tpu.dot_dimension_numbers<[1], [0], [0], [1], [0, 0, 1, 1], [], []>} : vector<48x120xbf16>, vector<120x16xbf16>, vector<48x16xf32> -> vector<48x16xf32>
    %116 = arith.addf %111, %115 : vector<48x16xf32>
    %c5 = arith.constant 5 : index
    %c0_72 = arith.constant 0 : index
    %c0_73 = arith.constant 0 : index
    %117 = vector.load %arg4[%c5, %c0_72, %c0_73] : memref<7x48x120xbf16, #tpu.memory_space<vmem>>, vector<1x48x120xbf16>
    %118 = vector.shape_cast %117 : vector<1x48x120xbf16> to vector<48x120xbf16>
    %119 = vector.extract_strided_slice %92 {offsets = [0, 80], sizes = [120, 16], strides = [1, 1]} : vector<120x112xbf16> to vector<120x16xbf16>
    %cst_74 = arith.constant dense<0.000000e+00> : vector<48x16xf32>
    %120 = tpu.matmul %118, %119, %cst_74 {dimension_numbers = #tpu.dot_dimension_numbers<[1], [0], [0], [1], [0, 0, 1, 1], [], []>} : vector<48x120xbf16>, vector<120x16xbf16>, vector<48x16xf32> -> vector<48x16xf32>
    %121 = arith.addf %116, %120 : vector<48x16xf32>
    %c6 = arith.constant 6 : index
    %c0_75 = arith.constant 0 : index
    %c0_76 = arith.constant 0 : index
    %122 = vector.load %arg4[%c6, %c0_75, %c0_76] : memref<7x48x120xbf16, #tpu.memory_space<vmem>>, vector<1x48x120xbf16>
    %123 = vector.shape_cast %122 : vector<1x48x120xbf16> to vector<48x120xbf16>
    %124 = vector.extract_strided_slice %92 {offsets = [0, 96], sizes = [120, 16], strides = [1, 1]} : vector<120x112xbf16> to vector<120x16xbf16>
    %cst_77 = arith.constant dense<0.000000e+00> : vector<48x16xf32>
    %125 = tpu.matmul %123, %124, %cst_77 {dimension_numbers = #tpu.dot_dimension_numbers<[1], [0], [0], [1], [0, 0, 1, 1], [], []>} : vector<48x120xbf16>, vector<120x16xbf16>, vector<48x16xf32> -> vector<48x16xf32>
    %126 = arith.addf %121, %125 : vector<48x16xf32>
    %c2_78 = arith.constant 2 : index
    %c0_79 = arith.constant 0 : index
    %127 = vector.load %arg10[%c2_78, %c0_79] : memref<3x16xf32, #tpu.memory_space<vmem>>, vector<1x16xf32>
    %128 = vector.broadcast %127 : vector<1x16xf32> to vector<48x16xf32>
    %129 = arith.addf %126, %128 : vector<48x16xf32>
    %cst_80 = arith.constant 0.000000e+00 : f32
    %130 = vector.broadcast %cst_80 : f32 to vector<48x16xf32>
    %131 = arith.cmpf ogt, %129, %130 : vector<48x16xf32>
    %cst_81 = arith.constant 0.00999999977 : f32
    %132 = vector.broadcast %cst_81 : f32 to vector<48x16xf32>
    %133 = arith.mulf %132, %129 : vector<48x16xf32>
    %134 = arith.select %131, %129, %133 : vector<48x16xi1>, vector<48x16xf32>
    %135 = vector.extract_strided_slice %134 {offsets = [0, 0], sizes = [8, 16], strides = [1, 1]} : vector<48x16xf32> to vector<8x16xf32>
    %136 = vector.extract_strided_slice %134 {offsets = [8, 0], sizes = [8, 16], strides = [1, 1]} : vector<48x16xf32> to vector<8x16xf32>
    %137 = arith.maximumf %135, %136 : vector<8x16xf32>
    %138 = vector.extract_strided_slice %134 {offsets = [16, 0], sizes = [8, 16], strides = [1, 1]} : vector<48x16xf32> to vector<8x16xf32>
    %139 = arith.maximumf %137, %138 : vector<8x16xf32>
    %140 = vector.extract_strided_slice %134 {offsets = [24, 0], sizes = [8, 16], strides = [1, 1]} : vector<48x16xf32> to vector<8x16xf32>
    %141 = arith.maximumf %139, %140 : vector<8x16xf32>
    %142 = vector.extract_strided_slice %134 {offsets = [32, 0], sizes = [8, 16], strides = [1, 1]} : vector<48x16xf32> to vector<8x16xf32>
    %143 = arith.maximumf %141, %142 : vector<8x16xf32>
    %144 = vector.extract_strided_slice %134 {offsets = [40, 0], sizes = [8, 16], strides = [1, 1]} : vector<48x16xf32> to vector<8x16xf32>
    %145 = arith.maximumf %143, %144 : vector<8x16xf32>
    %146 = tpu.concatenate %45, %89, %145 in 1 : vector<8x16xf32>, vector<8x16xf32>, vector<8x16xf32> -> vector<8x48xf32>
    %147 = arith.truncf %146 : vector<8x48xf32> to vector<8x48xbf16>
    %c0_82 = arith.constant 0 : index
    %c0_83 = arith.constant 0 : index
    %148 = vector.load %arg11[%c0_82, %c0_83] : memref<48x64xbf16, #tpu.memory_space<vmem>>, vector<48x64xbf16>
    %cst_84 = arith.constant dense<0.000000e+00> : vector<8x64xf32>
    %149 = tpu.matmul %147, %148, %cst_84 {dimension_numbers = #tpu.dot_dimension_numbers<[1], [0], [0], [1], [0, 0, 1, 1], [], []>} : vector<8x48xbf16>, vector<48x64xbf16>, vector<8x64xf32> -> vector<8x64xf32>
    %c0_85 = arith.constant 0 : index
    %c0_86 = arith.constant 0 : index
    %150 = vector.load %arg12[%c0_85, %c0_86] : memref<1x64xf32, #tpu.memory_space<vmem>>, vector<1x64xf32>
    %151 = vector.broadcast %150 : vector<1x64xf32> to vector<8x64xf32>
    %152 = arith.addf %149, %151 : vector<8x64xf32>
    %153 = arith.truncf %152 : vector<8x64xf32> to vector<8x64xbf16>
    %c0_87 = arith.constant 0 : index
    %c0_88 = arith.constant 0 : index
    %154 = vector.load %arg13[%c0_87, %c0_88] : memref<64x32xbf16, #tpu.memory_space<vmem>>, vector<64x32xbf16>
    %cst_89 = arith.constant dense<0.000000e+00> : vector<8x32xf32>
    %155 = tpu.matmul %153, %154, %cst_89 {dimension_numbers = #tpu.dot_dimension_numbers<[1], [0], [0], [1], [0, 0, 1, 1], [], []>} : vector<8x64xbf16>, vector<64x32xbf16>, vector<8x32xf32> -> vector<8x32xf32>
    %c0_90 = arith.constant 0 : index
    %c0_91 = arith.constant 0 : index
    %156 = vector.load %arg14[%c0_90, %c0_91] : memref<1x32xf32, #tpu.memory_space<vmem>>, vector<1x32xf32>
    %157 = vector.broadcast %156 : vector<1x32xf32> to vector<8x32xf32>
    %158 = arith.addf %155, %157 : vector<8x32xf32>
    %cst_92 = arith.constant 0.000000e+00 : f32
    %159 = vector.broadcast %cst_92 : f32 to vector<8x32xf32>
    %160 = arith.maximumf %158, %159 : vector<8x32xf32>
    %c0_93 = arith.constant 0 : index
    %c0_94 = arith.constant 0 : index
    %161 = vector.load %arg15[%c0_93, %c0_94] : memref<1x32xf32, #tpu.memory_space<vmem>>, vector<1x32xf32>
    %162 = vector.broadcast %161 : vector<1x32xf32> to vector<8x32xf32>
    %163 = arith.mulf %160, %162 : vector<8x32xf32>
    %cst_95 = arith.constant dense<0.000000e+00> : vector<8xf32>
    %164 = vector.multi_reduction <add>, %163, %cst_95 [1] : vector<8x32xf32> to vector<8xf32>
    %165 = vector.shape_cast %164 : vector<8xf32> to vector<8x1xf32>
    %c0_96 = arith.constant 0 : index
    %c0_97 = arith.constant 0 : index
    %166 = vector.load %arg16[%c0_96, %c0_97] : memref<1x1xf32, #tpu.memory_space<vmem>>, vector<1x1xf32>
    %167 = vector.broadcast %166 : vector<1x1xf32> to vector<8x1xf32>
    %168 = arith.addf %165, %167 : vector<8x1xf32>
    %169 = vector.extract_strided_slice %45 {offsets = [0, 0], sizes = [8, 14], strides = [1, 1]} : vector<8x16xf32> to vector<8x14xf32>
    %170 = vector.extract_strided_slice %89 {offsets = [0, 0], sizes = [8, 14], strides = [1, 1]} : vector<8x16xf32> to vector<8x14xf32>
    %171 = vector.extract_strided_slice %145 {offsets = [0, 0], sizes = [8, 14], strides = [1, 1]} : vector<8x16xf32> to vector<8x14xf32>
    %cst_98 = arith.constant 0.000000e+00 : f32
    %172 = vector.broadcast %cst_98 : f32 to vector<8x21xf32>
    %173 = tpu.concatenate %168, %169, %170, %171, %152, %172 in 1 : vector<8x1xf32>, vector<8x14xf32>, vector<8x14xf32>, vector<8x14xf32>, vector<8x64xf32>, vector<8x21xf32> -> vector<8x128xf32>
    %c0_99 = arith.constant 0 : index
    %c0_100 = arith.constant 0 : index
    %174 = vector.load %arg17[%c0_99, %c0_100] : memref<8x128xf32, #tpu.memory_space<vmem>>, vector<8x128xf32>
    tpu.vector_store %arg17[%c0_99, %c0_100], %173 {strides = array<i32>} : memref<8x128xf32, #tpu.memory_space<vmem>>, vector<8x128xf32>,
    return
  }
  func.func @transform_0(%arg0: i32) -> (i32, i32) {
    %c0_i32 = arith.constant 0 : i32
    %c0_i32_0 = arith.constant 0 : i32
    return %arg0, %c0_i32 : i32, i32
  }
  func.func @transform_1(%arg0: i32) -> (i32, i32, i32) {
    %c0_i32 = arith.constant 0 : i32
    %c0_i32_0 = arith.constant 0 : i32
    %c0_i32_1 = arith.constant 0 : i32
    %c0_i32_2 = arith.constant 0 : i32
    return %c0_i32, %c0_i32_0, %c0_i32_1 : i32, i32, i32
  }
  func.func @transform_2(%arg0: i32) -> (i32, i32, i32) {
    %c0_i32 = arith.constant 0 : i32
    %c0_i32_0 = arith.constant 0 : i32
    %c0_i32_1 = arith.constant 0 : i32
    %c0_i32_2 = arith.constant 0 : i32
    return %c0_i32, %c0_i32_0, %c0_i32_1 : i32, i32, i32
  }
  func.func @transform_3(%arg0: i32) -> (i32, i32, i32) {
    %c0_i32 = arith.constant 0 : i32
    %c0_i32_0 = arith.constant 0 : i32
    %c0_i32_1 = arith.constant 0 : i32
    %c0_i32_2 = arith.constant 0 : i32
    return %c0_i32, %c0_i32_0, %c0_i32_1 : i32, i32, i32
  }
  func.func @transform_4(%arg0: i32) -> (i32, i32) {
    %c0_i32 = arith.constant 0 : i32
    %c0_i32_0 = arith.constant 0 : i32
    %c0_i32_1 = arith.constant 0 : i32
    return %c0_i32, %c0_i32_0 : i32, i32
  }
  func.func @transform_5(%arg0: i32) -> (i32, i32) {
    %c0_i32 = arith.constant 0 : i32
    %c0_i32_0 = arith.constant 0 : i32
    %c0_i32_1 = arith.constant 0 : i32
    return %c0_i32, %c0_i32_0 : i32, i32
  }
  func.func @transform_6(%arg0: i32) -> (i32, i32) {
    %c0_i32 = arith.constant 0 : i32
    %c0_i32_0 = arith.constant 0 : i32
    %c0_i32_1 = arith.constant 0 : i32
    return %c0_i32, %c0_i32_0 : i32, i32
  }
  func.func @transform_7(%arg0: i32) -> (i32, i32) {
    %c0_i32 = arith.constant 0 : i32
    %c0_i32_0 = arith.constant 0 : i32
    %c0_i32_1 = arith.constant 0 : i32
    return %c0_i32, %c0_i32_0 : i32, i32
  }
  func.func @transform_8(%arg0: i32) -> (i32, i32) {
    %c0_i32 = arith.constant 0 : i32
    %c0_i32_0 = arith.constant 0 : i32
    %c0_i32_1 = arith.constant 0 : i32
    return %c0_i32, %c0_i32_0 : i32, i32
  }
  func.func @transform_9(%arg0: i32) -> (i32, i32) {
    %c0_i32 = arith.constant 0 : i32
    %c0_i32_0 = arith.constant 0 : i32
    %c0_i32_1 = arith.constant 0 : i32
    return %c0_i32, %c0_i32_0 : i32, i32
  }
  func.func @transform_10(%arg0: i32) -> (i32, i32) {
    %c0_i32 = arith.constant 0 : i32
    %c0_i32_0 = arith.constant 0 : i32
    %c0_i32_1 = arith.constant 0 : i32
    return %c0_i32, %c0_i32_0 : i32, i32
  }
  func.func @transform_11(%arg0: i32) -> (i32, i32) {
    %c0_i32 = arith.constant 0 : i32
    %c0_i32_0 = arith.constant 0 : i32
    %c0_i32_1 = arith.constant 0 : i32
    return %c0_i32, %c0_i32_0 : i32, i32
  }
  func.func @transform_12(%arg0: i32) -> (i32, i32) {
    %c0_i32 = arith.constant 0 : i32
    %c0_i32_0 = arith.constant 0 : i32
    %c0_i32_1 = arith.constant 0 : i32
    return %c0_i32, %c0_i32_0 : i32, i32
  }
  func.func @transform_13(%arg0: i32) -> (i32, i32) {
    %c0_i32 = arith.constant 0 : i32
    %c0_i32_0 = arith.constant 0 : i32
    %c0_i32_1 = arith.constant 0 : i32
    return %c0_i32, %c0_i32_0 : i32, i32
  }
  func.func @transform_14(%arg0: i32) -> (i32, i32) {
    %c0_i32 = arith.constant 0 : i32
    %c0_i32_0 = arith.constant 0 : i32
    %c0_i32_1 = arith.constant 0 : i32
    return %c0_i32, %c0_i32_0 : i32, i32
  }
  func.func @transform_15(%arg0: i32) -> (i32, i32) {
    %c0_i32 = arith.constant 0 : i32
    %c0_i32_0 = arith.constant 0 : i32
    %c0_i32_1 = arith.constant 0 : i32
    return %c0_i32, %c0_i32_0 : i32, i32
  }
  func.func @transform_16(%arg0: i32) -> (i32, i32) {
    %c0_i32 = arith.constant 0 : i32
    %c0_i32_0 = arith.constant 0 : i32
    return %arg0, %c0_i32 : i32, i32
  }
}

</mosaic_0001>

<bundles_post_ra>
// kernel: cnn_rul_student_stack_forward.1
= control target key start
LH: loop header
LB: loop body
LE: loop exit
PB: predicated region body
PF: predicated region fallthrough
CT: control target
= control target key end

     0   :  { %vm161_vm0 = vcmask 1044480   ;;  %vm136_vm1 = vcmask 343040   ;;  %s2573_s22 = smov 112   ;;  %s2575_s24 = smov 64   ;;  %s3439_s4 = inlined_call_operand.vmem [shape: bf16[42,42], index: 4, kind: input, shape index: {}]   ;;  %s3440_s5 = inlined_call_operand.vmem [shape: f32[1,42], index: 5, kind: input, shape index: {}]   ;;  %s3441_s0 = inlined_call_operand.vmem [shape: bf16[120,42], index: 0, kind: input, shape index: {}]   ;;  %s3442_s6 = inlined_call_operand.vmem [shape: bf16[42,48], index: 6, kind: input, shape index: {}]   ;;  %s3443_s1 = inlined_call_operand.vmem [shape: bf16[3,40,120], index: 1, kind: input, shape index: {}]   ;;  %s3444_s7 = inlined_call_operand.vmem [shape: bf16[42,80], index: 7, kind: input, shape index: {}]   ;;  %s3445_s2 = inlined_call_operand.vmem [shape: bf16[5,40,120], index: 2, kind: input, shape index: {}]   ;;  %s3446_s8 = inlined_call_operand.vmem [shape: bf16[42,112], index: 8, kind: input, shape index: {}]   ;;  %s3447_s9 = inlined_call_operand.vmem [shape: f32[3,16], index: 9, kind: input, shape index: {}]   ;;  %s3448_s3 = inlined_call_operand.vmem [shape: bf16[7,48,120], index: 3, kind: input, shape index: {}]   ;;  %s3449_s10 = inlined_call_operand.vmem [shape: bf16[48,64], index: 10, kind: input, shape index: {}]   ;;  %s3450_s11 = inlined_call_operand.vmem [shape: f32[1,64], index: 11, kind: input, shape index: {}]   ;;  %s3451_s12 = inlined_call_operand.vmem [shape: bf16[64,32], index: 12, kind: input, shape index: {}]   ;;  %s3452_s13 = inlined_call_operand.vmem [shape: f32[1,32], index: 13, kind: input, shape index: {}]   ;;  %s3453_s14 = inlined_call_operand.vmem [shape: f32[1,32], index: 14, kind: input, shape index: {}]   ;;  %s3454_s15 = inlined_call_operand.<no memory space> [shape: f32[1,1], index: 15, kind: input, shape index: {}]   ;;  %s3455_s16 = inlined_call_operand.vmem [shape: f32[8,128], index: 16, kind: output, shape index: {}]  }
   0x1   :  { %3457 = sst [smem:[#allocation3_spill]] %s3439_s4  ;;  %v2490_v6 = vld [vmem:[%s3441_s0] sm:$0xff]  ;;  %v2491_v7 = vld [vmem:[%s3441_s0 + $0x8] sm:$0xff]  ;;  %v2492_v8 = vld [vmem:[%s3441_s0 + $0x10] sm:$0xff]  ;;  %s2577_s20 = smov 48  }
   0x2   :  { %s3458_s23 = sld [smem:[#allocation3_spill]]  ;;  %v2493_v9 = vld [vmem:[%s3441_s0 + $0x18] sm:$0xff]  ;;  %v2494_v10 = vld [vmem:[%s3441_s0 + $0x20] sm:$0xff]  ;;  %v2495_v11 = vld [vmem:[%s3441_s0 + $0x28] sm:$0xff]  ;;  %s2580_s30 = smov 29  }
   0x3   :  { %v2496_v12 = vld [vmem:[%s3441_s0 + $0x30] sm:$0xff]  ;;  %v2501_v17 = vld [vmem:[%s3442_s6 + $0x8] sm:$0xff]  ;;  %v70_v18 = vld [vmem:[%s3441_s0 + $0x38] sm:$0xf]  ;;  %s2581_s4 = smov 15   ;;  %s2582_s21 = smov 43  }
   0x4   :  { %v2151_v13 = vld [vmem:[%s3442_s6 + $0x10] sm:$0xf]  ;;  %v2502_v14 = vld [vmem:[%s3442_s6 + $0x10] sm:$0x10]  ;;  %v110_v19 = vunpack.c.l.b16 %v70_v18  ;;  %v2500_v20 = vld [vmem:[%s3442_s6] sm:$0xff] }
   0x5   :  { %v2152_v15 = vor.u32 %v2502_v14, %v2151_v13  ;;  %v2729_v23 = vld [vmem:[%s3440_s5] ss:$0 sm:$0xff]  ;;  %s2579_s5 = smov 1  }
   0x6   :  { %v118_v21 = vpack.c.b16 %v110_v19, %v110_v19 }
   0x7   :  { %v314_v16 = vsel %vm161_vm0, %v2152_v15, 0 }
   0x8   :  { %v2131_v0 = vld [vmem:[%s3458_s23 + $0x10] sm:$0xf]  ;;  %v2499_v1 = vld [vmem:[%s3458_s23 + $0x10] sm:$0x10]  ;;  %v2498_v4 = vld [vmem:[%s3458_s23 + $0x8] sm:$0xff]  ;;  %321 = vmatpush.bf16.msra.mxu1 %v314_v16 }
   0x9   :  { %v2132_v2 = vor.u32 %v2499_v1, %v2131_v0  ;;  %v2497_v5 = vld [vmem:[%s3458_s23] sm:$0xff]  ;;  %s2574_s23 = smov 80  }
   0xb   :  { %v163_v3 = vsel %vm161_vm0, %v2132_v2, 0 }
   0xc   :  { %170 = vmatpush.bf16.msra.mxu0 %v163_v3  ;;  %322 = vmatpush.bf16.msra.mxu1 %v2501_v17 }
  0x10   :  { %171 = vmatpush.bf16.msra.mxu0 %v2498_v4  ;;  %323 = vmatpush.bf16.msra.mxu1 %v2500_v20 }
  0x14   :  { %172 = vmatpush.bf16.msra.mxu0 %v2497_v5 }
  0x17   :  { %2133 = vmatmul.msk.bf16.vlgmr.msra.gmra.mxu0 %vm136_vm1, %v2490_v6 }
  0x27   :  { %2134 = vmatmul.msk.bf16.gmra.mxu0 %vm136_vm1, %v2491_v7 }
  0x37   :  { %2135 = vmatmul.msk.bf16.gmra.mxu0 %vm136_vm1, %v2492_v8 }
  0x47   :  { %2136 = vmatmul.msk.bf16.gmra.mxu0 %vm136_vm1, %v2493_v9 }
  0x57   :  { %2137 = vmatmul.msk.bf16.gmra.mxu0 %vm136_vm1, %v2494_v10 }
  0x67   :  { %2138 = vmatmul.msk.bf16.gmra.mxu0 %vm136_vm1, %v2495_v11 }
  0x77   :  { %2139 = vmatmul.msk.bf16.gmra.mxu0 %vm136_vm1, %v2496_v12 }
  0x87   :  { %2140 = vmatmul.msk.bf16.gmra.mxu0 %vm136_vm1, %v118_v21 }
  0x94   :  { %v174_v22 = vpop.f32.mrf.mxu0 }
  0x95   :  { %v175_v24 = vadd.f32 %v2729_v23, %v174_v22 }
  0x97   :  { %v228_v26 = vmul.f32 0.01, %v175_v24  ;;  %vm213_vm2 = vcmp.gt.f32.partialorder %v175_v24, 0.0 }
  0x99   :  { %v243_v29 = vsel %vm213_vm2, %v175_v24, %v228_v26 }
  0x9c   :  { %v176_v25 = vpop.f32.mrf.mxu0 }
  0x9d   :  { %v177_v27 = vadd.f32 %v2729_v23, %v176_v25 }
  0x9f   :  { %vm214_vm3 = vcmp.gt.f32.partialorder %v177_v27, 0.0  ;;  %v229_v28 = vmul.f32 0.01, %v177_v27 }
  0xa1   :  { %v244_v30 = vsel %vm214_vm3, %v177_v27, %v229_v28  ;;  %vm474_vm3 = vcmask 1043456  }
  0xa2   :  { %v2733_v31 = vpack.c.bf16 %v244_v30, %v243_v29 }
  0xa4   :  { %v179_v32 = vpop.f32.mrf.mxu0  ;;  %2153 = vmatmul.msk.bf16.vlgmr.msra.gmra.mxu1 %vm136_vm1, %v2733_v31 }
  0xa5   :  { %v180_v33 = vadd.f32 %v2729_v23, %v179_v32 }
  0xa7   :  { %v230_v35 = vmul.f32 0.01, %v180_v33  ;;  %vm215_vm4 = vcmp.gt.f32.partialorder %v180_v33, 0.0 }
  0xa9   :  { %v245_v38 = vsel %vm215_vm4, %v180_v33, %v230_v35  ;;  %vm464_vm4 = vcmask 982016  }
  0xac   :  { %v181_v34 = vpop.f32.mrf.mxu0 }
  0xad   :  { %v182_v36 = vadd.f32 %v2729_v23, %v181_v34 }
  0xaf   :  { %vm216_vm5 = vcmp.gt.f32.partialorder %v182_v36, 0.0  ;;  %v231_v37 = vmul.f32 0.01, %v182_v36 }
  0xb1   :  { %v246_v39 = vsel %vm216_vm5, %v182_v36, %v231_v37 }
  0xb2   :  { %v2739_v40 = vpack.c.bf16 %v246_v39, %v245_v38 }
  0xb4   :  { %v184_v41 = vpop.f32.mrf.mxu0  ;;  %2154 = vmatmul.msk.bf16.gmra.mxu1 %vm136_vm1, %v2739_v40 }
  0xb5   :  { %v185_v42 = vadd.f32 %v2729_v23, %v184_v41 }
  0xb7   :  { %v232_v44 = vmul.f32 0.01, %v185_v42  ;;  %vm217_vm6 = vcmp.gt.f32.partialorder %v185_v42, 0.0 }
  0xb9   :  { %v247_v47 = vsel %vm217_vm6, %v185_v42, %v232_v44 }
  0xbc   :  { %v186_v43 = vpop.f32.mrf.mxu0 }
  0xbd   :  { %v187_v45 = vadd.f32 %v2729_v23, %v186_v43 }
  0xbf   :  { %vm218_vm7 = vcmp.gt.f32.partialorder %v187_v45, 0.0  ;;  %v233_v46 = vmul.f32 0.01, %v187_v45 }
  0xc1   :  { %v248_v48 = vsel %vm218_vm7, %v187_v45, %v233_v46 }
  0xc2   :  { %v2745_v49 = vpack.c.bf16 %v248_v48, %v247_v47 }
  0xc4   :  { %v189_v50 = vpop.f32.mrf.mxu0  ;;  %2155 = vmatmul.msk.bf16.gmra.mxu1 %vm136_vm1, %v2745_v49 }
  0xc5   :  { %v190_v51 = vadd.f32 %v2729_v23, %v189_v50 }
  0xc7   :  { %v234_v53 = vmul.f32 0.01, %v190_v51  ;;  %vm219_vm8 = vcmp.gt.f32.partialorder %v190_v51, 0.0 }
  0xc9   :  { %v249_v56 = vsel %vm219_vm8, %v190_v51, %v234_v53 }
  0xcc   :  { %v191_v52 = vpop.f32.mrf.mxu0 }
  0xcd   :  { %v192_v54 = vadd.f32 %v2729_v23, %v191_v52 }
  0xcf   :  { %vm220_vm9 = vcmp.gt.f32.partialorder %v192_v54, 0.0  ;;  %v235_v55 = vmul.f32 0.01, %v192_v54 }
  0xd1   :  { %v250_v57 = vsel %vm220_vm9, %v192_v54, %v235_v55 }
  0xd2   :  { %v2751_v58 = vpack.c.bf16 %v250_v57, %v249_v56 }
  0xd4   :  { %v194_v59 = vpop.f32.mrf.mxu0  ;;  %2156 = vmatmul.msk.bf16.gmra.mxu1 %vm136_vm1, %v2751_v58 }
  0xd5   :  { %v195_v60 = vadd.f32 %v2729_v23, %v194_v59 }
  0xd7   :  { %v236_v62 = vmul.f32 0.01, %v195_v60  ;;  %vm221_vm10 = vcmp.gt.f32.partialorder %v195_v60, 0.0 }
  0xd9   :  { %v251_v1 = vsel %vm221_vm10, %v195_v60, %v236_v62 }
  0xdc   :  { %v196_v61 = vpop.f32.mrf.mxu0 }
  0xdd   :  { %v197_v63 = vadd.f32 %v2729_v23, %v196_v61 }
  0xdf   :  { %vm222_vm11 = vcmp.gt.f32.partialorder %v197_v63, 0.0  ;;  %v237_v0 = vmul.f32 0.01, %v197_v63 }
  0xe1   :  { %v252_v2 = vsel %vm222_vm11, %v197_v63, %v237_v0 }
  0xe2   :  { %v2757_v3 = vpack.c.bf16 %v252_v2, %v251_v1 }
  0xe4   :  { %v199_v4 = vpop.f32.mrf.mxu0  ;;  %2157 = vmatmul.msk.bf16.gmra.mxu1 %vm136_vm1, %v2757_v3 }
  0xe5   :  { %v200_v5 = vadd.f32 %v2729_v23, %v199_v4 }
  0xe7   :  { %v238_v7 = vmul.f32 0.01, %v200_v5  ;;  %vm223_vm12 = vcmp.gt.f32.partialorder %v200_v5, 0.0 }
  0xe9   :  { %v253_v10 = vsel %vm223_vm12, %v200_v5, %v238_v7 }
  0xec   :  { %v201_v6 = vpop.f32.mrf.mxu0 }
  0xed   :  { %v202_v8 = vadd.f32 %v2729_v23, %v201_v6 }
  0xef   :  { %vm224_vm13 = vcmp.gt.f32.partialorder %v202_v8, 0.0  ;;  %v239_v9 = vmul.f32 0.01, %v202_v8 }
  0xf1   :  { %v254_v11 = vsel %vm224_vm13, %v202_v8, %v239_v9 }
  0xf2   :  { %v2763_v12 = vpack.c.bf16 %v254_v11, %v253_v10 }
  0xf4   :  { %v204_v13 = vpop.f32.mrf.mxu0  ;;  %2158 = vmatmul.msk.bf16.gmra.mxu1 %vm136_vm1, %v2763_v12 }
  0xf5   :  { %v205_v14 = vadd.f32 %v2729_v23, %v204_v13 }
  0xf7   :  { %v240_v16 = vmul.f32 0.01, %v205_v14  ;;  %vm225_vm14 = vcmp.gt.f32.partialorder %v205_v14, 0.0 }
  0xf9   :  { %v255_v19 = vsel %vm225_vm14, %v205_v14, %v240_v16 }
  0xfc   :  { %v206_v15 = vpop.f32.mrf.mxu0 }
  0xfd   :  { %v207_v17 = vadd.f32 %v2729_v23, %v206_v15 }
  0xff   :  { %vm226_vm15 = vcmp.gt.f32.partialorder %v207_v17, 0.0  ;;  %v241_v18 = vmul.f32 0.01, %v207_v17 }
 0x101   :  { %v256_v20 = vsel %vm226_vm15, %v207_v17, %v241_v18 }
 0x102   :  { %v2769_v21 = vpack.c.bf16 %v256_v20, %v255_v19 }
 0x104   :  { %v209_v22 = vpop.f32.mrf.mxu0  ;;  %2159 = vmatmul.msk.bf16.gmra.mxu1 %vm136_vm1, %v2769_v21 }
 0x105   :  { %v210_v24 = vadd.f32 %v2729_v23, %v209_v22 }
 0x107   :  { %v242_v25 = vmul.f32 0.01, %v210_v24  ;;  %vm227_vm2 = vcmp.gt.f32.partialorder %v210_v24, 0.0 }
 0x109   :  { %v257_v27 = vsel %vm227_vm2, %v210_v24, %v242_v25 }
 0x10a   :  { %v2774_v28 = vpack.c.bf16 %v257_v27, %v257_v27  ;;  %v2503_v27 = vld [vmem:[%s3443_s1] sm:$0xff] }
 0x10c   :  { %v211_v26 = vpop.f32.mrf.mxu0 }
 0x114   :  { %2160 = vmatmul.msk.bf16.gmra.mxu1 %vm136_vm1, %v2774_v28 }
 0x121   :  { %v325_v29 = vpop.f32.mrf.mxu1 }
 0x122   :  { %v364_v19 = vpack.c.bf16 %v325_v29, %v325_v29  ;;  %v2214_v29 = vld [vmem:[%s3444_s7 + $0x10] sm:$0xf] }
 0x124   :  { %v418_v25 = vunpack.c.l.b16 %v364_v19 }
 0x129   :  { %v327_v30 = vpop.f32.mrf.mxu1 }
 0x12a   :  { %v365_v16 = vpack.c.bf16 %v327_v30, %v327_v30  ;;  %v2511_v30 = vld [vmem:[%s3444_s7 + $0x10] sm:$0x10] }
 0x12c   :  { %v419_v22 = vunpack.c.l.b16 %v365_v16 }
 0x12e   :  { %v2800_v26 = vpack.c.b16 %v419_v22, %v418_v25 }
 0x131   :  { %v330_v32 = vpop.f32.mrf.mxu1 }
 0x132   :  { %v366_v14 = vpack.c.bf16 %v330_v32, %v330_v32  ;;  %v2215_v32 = vor.u32 %v2511_v30, %v2214_v29 }
 0x134   :  { %v420_v20 = vunpack.c.l.b16 %v366_v14 }
 0x139   :  { %v332_v33 = vpop.f32.mrf.mxu1 }
 0x13a   :  { %v367_v10 = vpack.c.bf16 %v332_v33, %v332_v33  ;;  %v688_v33 = vsel %vm161_vm0, %v2215_v32, 0 }
 0x13c   :  { %v421_v17 = vunpack.c.l.b16 %v367_v10 }
 0x13e   :  { %v2797_v24 = vpack.c.b16 %v421_v17, %v420_v20 }
 0x141   :  { %v335_v34 = vpop.f32.mrf.mxu1 }
 0x142   :  { %v368_v8 = vpack.c.bf16 %v335_v34, %v335_v34  ;;  %v2510_v34 = vld [vmem:[%s3444_s7 + $0x8] sm:$0xff] }
 0x144   :  { %v422_v15 = vunpack.c.l.b16 %v368_v8 }
 0x149   :  { %v337_v35 = vpop.f32.mrf.mxu1 }
 0x14a   :  { %v369_v5 = vpack.c.bf16 %v337_v35, %v337_v35  ;;  %v2509_v35 = vld [vmem:[%s3444_s7] sm:$0xff]  ;;  %s2572_s7 = smov 96  }
 0x14c   :  { %v423_v11 = vunpack.c.l.b16 %v369_v5 }
 0x14e   :  { %v2794_v18 = vpack.c.b16 %v423_v11, %v422_v15 }
 0x151   :  { %v340_v36 = vpop.f32.mrf.mxu1 }
 0x152   :  { %v370_v2 = vpack.c.bf16 %v340_v36, %v340_v36  ;;  %v2504_v36 = vld [vmem:[%s3443_s1 + $0x8] sm:$0xff] }
 0x154   :  { %v424_v9 = vunpack.c.l.b16 %v370_v2 }
 0x159   :  { %v342_v37 = vpop.f32.mrf.mxu1 }
 0x15a   :  { %v371_v63 = vpack.c.bf16 %v342_v37, %v342_v37  ;;  %v383_v37 = vld [vmem:[%s3443_s1 + $0x10] sm:$0xf] }
 0x15c   :  { %v425_v6 = vunpack.c.l.b16 %v371_v63 }
 0x15e   :  { %v2791_v13 = vpack.c.b16 %v425_v6, %v424_v9 }
 0x161   :  { %v345_v38 = vpop.f32.mrf.mxu1 }
 0x162   :  { %v372_v61 = vpack.c.bf16 %v345_v38, %v345_v38  ;;  %v510_v38 = vunpack.c.l.b16 %v383_v37 }
 0x164   :  { %v426_v4 = vunpack.c.l.b16 %v372_v61 }
 0x169   :  { %v347_v39 = vpop.f32.mrf.mxu1 }
 0x16a   :  { %v373_v57 = vpack.c.bf16 %v347_v39, %v347_v39  ;;  %v513_v39 = vpack.c.b16 %v510_v38, %v510_v38 }
 0x16c   :  { %v427_v0 = vunpack.c.l.b16 %v373_v57 }
 0x16e   :  { %v2788_v7 = vpack.c.b16 %v427_v0, %v426_v4 }
 0x171   :  { %v350_v23 = vpop.f32.mrf.mxu1 }
 0x172   :  { %v374_v54 = vpack.c.bf16 %v350_v23, %v350_v23 }
 0x174   :  { %v428_v62 = vunpack.c.l.b16 %v374_v54 }
 0x179   :  { %v352_v41 = vpop.f32.mrf.mxu1 }
 0x17a   :  { %v375_v51 = vpack.c.bf16 %v352_v41, %v352_v41 }
 0x17c   :  { %v429_v59 = vunpack.c.l.b16 %v375_v51 }
 0x17e   :  { %v2785_v1 = vpack.c.b16 %v429_v59, %v428_v62 }
 0x181   :  { %v355_v42 = vpop.f32.mrf.mxu1 }
 0x182   :  { %v376_v48 = vpack.c.bf16 %v355_v42, %v355_v42 }
 0x184   :  { %v430_v55 = vunpack.c.l.b16 %v376_v48 }
 0x189   :  { %v357_v43 = vpop.f32.mrf.mxu1 }
 0x18a   :  { %v377_v46 = vpack.c.bf16 %v357_v43, %v357_v43 }
 0x18c   :  { %v431_v52 = vunpack.c.l.b16 %v377_v46 }
 0x18e   :  { %v2782_v60 = vpack.c.b16 %v431_v52, %v430_v55 }
 0x191   :  { %v360_v44 = vpop.f32.mrf.mxu1 }
 0x192   :  { %v378_v45 = vpack.c.bf16 %v360_v44, %v360_v44 }
 0x194   :  { %v432_v47 = vunpack.c.l.b16 %v378_v45 }
 0x196   :  { %v2778_v50 = vpack.c.b16 %v432_v47, %v432_v47 }
 0x198   :  { %v531_v53 = vsel %vm474_vm3, %v2778_v50, 0 }
 0x199   :  { %v362_v56 = vpop.f32.mrf.mxu1  ;;  %533 = vmatpush.bf16.msra.mxu3 %v531_v53 }
 0x19d   :  { %534 = vmatpush.bf16.msra.mxu3 %v2782_v60 }
 0x1a1   :  { %535 = vmatpush.bf16.msra.mxu3 %v2785_v1 }
 0x1a5   :  { %536 = vmatpush.bf16.msra.mxu3 %v2788_v7 }
 0x1a9   :  { %537 = vmatpush.bf16.msra.mxu3 %v2791_v13 }
 0x1ad   :  { %538 = vmatpush.bf16.msra.mxu3 %v2794_v18 }
 0x1b1   :  { %539 = vmatpush.bf16.msra.mxu3 %v2797_v24 }
 0x1b5   :  { %540 = vmatpush.bf16.msra.mxu3 %v2800_v26 }
 0x1b8   :  { %2185 = vmatmul.msk.bf16.vlgmr.msra.gmra.mxu3 %vm464_vm4, %v2503_v27 }
 0x1b9   :  { %695 = vmatpush.bf16.msrb.mxu3 %v688_v33 }
 0x1bd   :  { %696 = vmatpush.bf16.msrb.mxu3 %v2510_v34 }
 0x1c1   :  { %697 = vmatpush.bf16.msrb.mxu3 %v2509_v35 }
 0x1c8   :  { %2186 = vmatmul.msk.bf16.gmra.mxu3 %vm464_vm4, %v2504_v36 }
 0x1d8   :  { %2187 = vmatmul.msk.bf16.gmra.mxu3 %vm464_vm4, %v513_v39 }
 0x1e8   :  { %2216 = vmatmul.msk.bf16.vlgmr.msrb.gmra.mxu3 %vm136_vm1, %v2733_v31 }
 0x1f8   :  { %2217 = vmatmul.msk.bf16.gmra.mxu3 %vm136_vm1, %v2739_v40 }
 0x208   :  { %2218 = vmatmul.msk.bf16.gmra.mxu3 %vm136_vm1, %v2745_v49 }
 0x218   :  { %2219 = vmatmul.msk.bf16.gmra.mxu3 %vm136_vm1, %v2751_v58 }
 0x228   :  { %2220 = vmatmul.msk.bf16.gmra.mxu3 %vm136_vm1, %v2757_v3 }
 0x238   :  { %2221 = vmatmul.msk.bf16.gmra.mxu3 %vm136_vm1, %v2763_v12 }
 0x23b   :  { %v2840_v23 = vpop.f32.mrf.mxu3 }
 0x243   :  { %v2842_v41 = vpop.f32.mrf.mxu3 }
 0x248   :  { %2222 = vmatmul.msk.bf16.gmra.mxu3 %vm136_vm1, %v2769_v21 }
 0x24b   :  { %v2846_v42 = vpop.f32.mrf.mxu3 }
 0x253   :  { %v2848_v43 = vpop.f32.mrf.mxu3 }
 0x258   :  { %2223 = vmatmul.msk.bf16.gmra.mxu3 %vm136_vm1, %v2774_v28 }
 0x25b   :  { %v2852_v44 = vpop.f32.mrf.mxu3 }
 0x263   :  { %v554_v45 = vpop.f32.mrf.mxu3 }
 0x26b   :  { %v699_v46 = vpop.f32.mrf.mxu3 }
 0x26c   :  { %v738_v32 = vpack.c.bf16 %v699_v46, %v699_v46 }
 0x26e   :  { %v792_v35 = vunpack.c.l.b16 %v738_v32  ;;  %v2309_v32 = vld [vmem:[%s3446_s8 + $0x10] sm:$0xf] }
 0x273   :  { %v701_v47 = vpop.f32.mrf.mxu3 }
 0x274   :  { %v739_v29 = vpack.c.bf16 %v701_v47, %v701_v47 }
 0x276   :  { %v793_v34 = vunpack.c.l.b16 %v739_v29  ;;  %v2516_v29 = vld [vmem:[%s3445_s2 + $0x28] sm:$0xff] }
 0x278   :  { %v2882_v36 = vpack.c.b16 %v793_v34, %v792_v35 }
 0x27b   :  { %v2854_v48 = vpop.f32.mrf.mxu3 }
 0x283   :  { %v2856_v51 = vpop.f32.mrf.mxu3 }
 0x28b   :  { %v709_v52 = vpop.f32.mrf.mxu3 }
 0x28c   :  { %v742_v0 = vpack.c.bf16 %v709_v52, %v709_v52 }
 0x28e   :  { %v796_v5 = vunpack.c.l.b16 %v742_v0 }
 0x293   :  { %v711_v53 = vpop.f32.mrf.mxu3 }
 0x294   :  { %v743_v62 = vpack.c.bf16 %v711_v53, %v711_v53 }
 0x296   :  { %v797_v4 = vunpack.c.l.b16 %v743_v62 }
 0x298   :  { %v2862_v6 = vpack.c.b16 %v797_v4, %v796_v5 }
 0x29b   :  { %v714_v54 = vpop.f32.mrf.mxu3 }
 0x29c   :  { %v744_v55 = vpack.c.bf16 %v714_v54, %v714_v54 }
 0x29e   :  { %v798_v59 = vunpack.c.l.b16 %v744_v55 }
 0x2a3   :  { %v716_v56 = vpop.f32.mrf.mxu3 }
 0x2a4   :  { %v745_v57 = vpack.c.bf16 %v716_v56, %v716_v56 }
 0x2a6   :  { %v799_v61 = vunpack.c.l.b16 %v745_v57  ;;  %v741_v57 = vpack.c.bf16 %v2856_v51, %v2856_v51 }
 0x2a8   :  { %v2858_v63 = vpack.c.b16 %v799_v61, %v798_v59  ;;  %v740_v59 = vpack.c.bf16 %v2854_v48, %v2854_v48  ;;  %v795_v61 = vunpack.c.l.b16 %v741_v57  ;;  %v2255_v57 = vld [vmem:[%s3445_s2 + $0x38] sm:$0xf] }
 0x2aa   :  { %953 = vrot.lane.b32.xlu2 %v2858_v63, %s2572_s7  ;;  %v794_v62 = vunpack.c.l.b16 %v740_v59  ;;  %v943_v59 = vunpack.c.l.b16 %v2255_v57 }
 0x2ab   :  { %v719_v2 = vpop.f32.mrf.mxu3 }
 0x2ac   :  { %v746_v20 = vpack.c.bf16 %v719_v2, %v719_v2  ;;  %v808_v0 = vpack.c.b16 %v795_v61, %v794_v62 }
 0x2ae   :  { %v800_v27 = vunpack.c.l.b16 %v746_v20 }
 0x2b2   :  { %951 = vrot.lane.b32.xlu2 %v2862_v6, %s2572_s7 }
 0x2b3   :  { %v721_v8 = vpop.f32.mrf.mxu3 }
 0x2b4   :  { %v747_v17 = vpack.c.bf16 %v721_v8, %v721_v8 }
 0x2b6   :  { %v801_v25 = vunpack.c.l.b16 %v747_v17 }
 0x2b8   :  { %v2876_v30 = vpack.c.b16 %v801_v25, %v800_v27 }
 0x2ba   :  { %455 = vrot.lane.b32.xlu2 %v2778_v50, %s2573_s22 }
 0x2bb   :  { %v724_v9 = vpop.f32.mrf.mxu3 }
 0x2bc   :  { %v748_v10 = vpack.c.bf16 %v724_v9, %v724_v9 }
 0x2be   :  { %v802_v15 = vunpack.c.l.b16 %v748_v10 }
 0x2c2   :  { %449 = vrot.lane.b32.xlu2 %v2788_v7, %s2573_s22 }
 0x2c3   :  { %v726_v11 = vpop.f32.mrf.mxu3 }
 0x2c4   :  { %v749_v14 = vpack.c.bf16 %v726_v11, %v726_v11 }
 0x2c6   :  { %v803_v16 = vunpack.c.l.b16 %v749_v14 }
 0x2c8   :  { %v2870_v19 = vpack.c.b16 %v803_v16, %v802_v15 }
 0x2ca   :  { %443 = vrot.lane.b32.xlu2 %v2797_v24, %s2573_s22  ;;  %957 = vrot.lane.b32.xlu1 %v2870_v19, %s2572_s7 }
 0x2cb   :  { %v729_v22 = vpop.f32.mrf.mxu3 }
 0x2cc   :  { %v750_v46 = vpack.c.bf16 %v729_v22, %v729_v22 }
 0x2ce   :  { %v804_v54 = vunpack.c.l.b16 %v750_v46 }
 0x2d2   :  { %587 = vrot.lane.b32.xlu2 %v2782_v60, %s2572_s7  ;;  %955 = vrot.lane.b32.xlu1 %v2876_v30, %s2572_s7 }
 0x2d3   :  { %v731_v33 = vpop.f32.mrf.mxu3 }
 0x2d4   :  { %v751_v39 = vpack.c.bf16 %v731_v33, %v731_v33  ;;  %v2524_v33 = vld [vmem:[%s3446_s8 + $0x10] sm:$0x10] }
 0x2d5   :  { %v2310_v34 = vor.u32 %v2524_v33, %v2309_v32 }
 0x2d6   :  { %v805_v52 = vunpack.c.l.b16 %v751_v39 }
 0x2d7   :  { %v1224_v39 = vsel %vm161_vm0, %v2310_v34, 0 }
 0x2d8   :  { %v813_v56 = vpack.c.b16 %v805_v52, %v804_v54  ;;  %v2517_v54 = vld [vmem:[%s3445_s2 + $0x30] sm:$0xff] }
 0x2da   :  { %581 = vrot.lane.b32.xlu2 %v2791_v13, %s2572_s7  ;;  %947 = vrot.lane.b32.xlu1 %v2882_v36, %s2572_s7 }
 0x2db   :  { %v734_v37 = vpop.f32.mrf.mxu3 }
 0x2dc   :  { %v752_v38 = vpack.c.bf16 %v734_v37, %v734_v37 }
 0x2de   :  { %v806_v45 = vunpack.c.l.b16 %v752_v38 }
 0x2e0   :  { %v814_v47 = vpack.c.b16 %v806_v45, %v806_v45  ;;  %v2523_v45 = vld [vmem:[%s3446_s8 + $0x8] sm:$0xff] }
 0x2e2   :  { %575 = vrot.lane.b32.xlu2 %v2800_v26, %s2572_s7  ;;  %451 = vrot.lane.b32.xlu1 %v2785_v1, %s2573_s22  ;;  %v903_v53 = vsel %vm474_vm3, %v814_v47, 0 }
 0x2e3   :  { %961 = vrot.lane.b32.xlu0 %v814_v47, %s2572_s7  ;;  %v736_v55 = vpop.f32.mrf.mxu3  ;;  %905 = vmatpush.bf16.msrb.mxu0 %v903_v53  ;;  %v2505_v53 = vld [vmem:[%s3443_s1 + $0x14] sm:$0xff] }
 0x2e7   :  { %906 = vmatpush.bf16.msrb.mxu0 %v813_v56 }
 0x2ea   :  { %825 = vrot.lane.b32.xlu2 %v2870_v19, %s2573_s22  ;;  %445 = vrot.lane.b32.xlu1 %v2794_v18, %s2573_s22 }
 0x2eb   :  { %959 = vrot.lane.b32.xlu0 %v813_v56, %s2572_s7  ;;  %907 = vmatpush.bf16.msrb.mxu0 %v2870_v19 }
 0x2ef   :  { %908 = vmatpush.bf16.msrb.mxu0 %v2876_v30 }
 0x2f2   :  { %819 = vrot.lane.b32.xlu2 %v2862_v6, %s2573_s22  ;;  %589 = vrot.lane.b32.xlu1 %v2778_v50, %s2572_s7 }
 0x2f3   :  { %949 = vrot.lane.b32.xlu0 %v808_v0, %s2572_s7  ;;  %909 = vmatpush.bf16.msrb.mxu0 %v2858_v63 }
 0x2f7   :  { %910 = vmatpush.bf16.msrb.mxu0 %v2862_v6 }
 0x2fa   :  { %1037 = vrot.lane.b32.xlu2 %v2876_v30, %s2574_s23  ;;  %583 = vrot.lane.b32.xlu1 %v2788_v7, %s2572_s7 }
 0x2fb   :  { %453 = vrot.lane.b32.xlu0 %v2782_v60, %s2573_s22  ;;  %911 = vmatpush.bf16.msrb.mxu0 %v808_v0 }
 0x2ff   :  { %912 = vmatpush.bf16.msrb.mxu0 %v2882_v36 }
 0x302   :  { %1035 = vrot.lane.b32.xlu2 %v2858_v63, %s2574_s23  ;;  %577 = vrot.lane.b32.xlu1 %v2797_v24, %s2572_s7 }
 0x303   :  { %447 = vrot.lane.b32.xlu0 %v2791_v13, %s2573_s22 }
 0x304   :  { %v954_v50 = vpop.permute.xlu2 %953 }
 0x30a   :  { %1033 = vrot.lane.b32.xlu2 %v2862_v6, %s2574_s23  ;;  %827 = vrot.lane.b32.xlu1 %v813_v56, %s2573_s22 }
 0x30b   :  { %441 = vrot.lane.b32.xlu0 %v2800_v26, %s2573_s22 }
 0x30c   :  { %v952_v60 = vpop.permute.xlu2 %951 }
 0x312   :  { %1031 = vrot.lane.b32.xlu2 %v808_v0, %s2574_s23  ;;  %821 = vrot.lane.b32.xlu1 %v2858_v63, %s2573_s22 }
 0x313   :  { %585 = vrot.lane.b32.xlu0 %v2785_v1, %s2572_s7 }
 0x314   :  { %v456_v7 = vpop.permute.xlu2 %455 }
 0x315   :  { %v476_v13 = vsel %vm474_vm3, %v456_v7, 0 }
 0x316   :  { %478 = vmatpush.bf16.msra.mxu2 %v476_v13  ;;  %v2165_v13 = vld [vmem:[%s3443_s1 + $0x24] sm:$0xf] }
 0x31a   :  { %815 = vrot.lane.b32.xlu1 %v2882_v36, %s2573_s22  ;;  %1043 = vrot.lane.b32.xlu2 %v814_v47, %s2574_s23 }
 0x31b   :  { %579 = vrot.lane.b32.xlu0 %v2794_v18, %s2572_s7 }
 0x31c   :  { %v450_v24 = vpop.permute.xlu2 %449 }
 0x322   :  { %1041 = vrot.lane.b32.xlu1 %v813_v56, %s2574_s23  ;;  %1125 = vrot.lane.b32.xlu2 %v814_v47, %s2575_s24 }
 0x323   :  { %829 = vrot.lane.b32.xlu0 %v814_v47, %s2573_s22  ;;  %v2522_v47 = vld [vmem:[%s3446_s8] sm:$0xff] }
 0x324   :  { %v444_v1 = vpop.permute.xlu2 %443 }
 0x32a   :  { %1029 = vrot.lane.b32.xlu2 %v2882_v36, %s2574_s23 }
 0x32b   :  { %823 = vrot.lane.b32.xlu0 %v2876_v30, %s2573_s22 }
 0x32c   :  { %v2948_v26 = vpop.permute.xlu2 %587 }
 0x332   :  { %1113 = vrot.lane.b32.xlu2 %v808_v0, %s2575_s24 }
 0x333   :  { %817 = vrot.lane.b32.xlu0 %v808_v0, %s2573_s22  ;;  %v2506_v0 = vld [vmem:[%s3443_s1 + $0x1c] sm:$0xff] }
 0x334   :  { %v2952_v18 = vpop.permute.xlu2 %581 }
 0x33b   :  { %1039 = vrot.lane.b32.xlu0 %v2870_v19, %s2574_s23 }
 0x33c   :  { %v2956_v48 = vpop.permute.xlu2 %575  ;;  %v958_v4 = vpop.permute.xlu1 %957 }
 0x343   :  { %1123 = vrot.lane.b32.xlu0 %v813_v56, %s2575_s24 }
 0x344   :  { %v2959_v51 = vpop.permute.xlu2 %825  ;;  %v956_v10 = vpop.permute.xlu1 %955 }
 0x34b   :  { %1121 = vrot.lane.b32.xlu0 %v2870_v19, %s2575_s24 }
 0x34c   :  { %v2963_v2 = vpop.permute.xlu2 %819  ;;  %v948_v16 = vpop.permute.xlu1 %947 }
 0x353   :  { %1119 = vrot.lane.b32.xlu0 %v2876_v30, %s2575_s24 }
 0x354   :  { %v2967_v5 = vpop.permute.xlu2 %1037  ;;  %v452_v22 = vpop.permute.xlu1 %451 }
 0x355   :  { %v962_v8 = vpop.permute.xlu0 %961 }
 0x356   :  { %v980_v9 = vsel %vm474_vm3, %v962_v8, 0 }
 0x357   :  { %982 = vmatpush.bf16.msrb.mxu1 %v980_v9 }
 0x35c   :  { %v2970_v11 = vpop.permute.xlu2 %1035  ;;  %v446_v30 = vpop.permute.xlu1 %445 }
 0x35d   :  { %v960_v14 = vpop.permute.xlu0 %959 }
 0x35e   :  { %983 = vmatpush.bf16.msrb.mxu1 %v960_v14 }
 0x362   :  { %984 = vmatpush.bf16.msrb.mxu1 %v958_v4 }
 0x364   :  { %v2972_v15 = vpop.permute.xlu2 %1033  ;;  %v590_v46 = vpop.permute.xlu1 %589 }
 0x365   :  { %v950_v17 = vpop.permute.xlu0 %949  ;;  %v608_v55 = vsel %vm474_vm3, %v590_v46, 0 }
 0x366   :  { %985 = vmatpush.bf16.msrb.mxu1 %v956_v10 }
 0x36a   :  { %986 = vmatpush.bf16.msrb.mxu1 %v954_v50  ;;  %v946_v50 = vpack.c.b16 %v943_v59, %v943_v59 }
 0x36c   :  { %v2974_v19 = vpop.permute.xlu2 %1031  ;;  %v584_v61 = vpop.permute.xlu1 %583 }
 0x36d   :  { %v454_v20 = vpop.permute.xlu0 %453 }
 0x36e   :  { %479 = vmatpush.bf16.msra.mxu2 %v454_v20  ;;  %987 = vmatpush.bf16.msrb.mxu1 %v952_v60  ;;  %v2192_v20 = vld [vmem:[%s3443_s1 + $0x38] sm:$0xf] }
 0x372   :  { %480 = vmatpush.bf16.msra.mxu2 %v452_v22  ;;  %988 = vmatpush.bf16.msrb.mxu1 %v950_v17  ;;  %v571_v22 = vunpack.c.l.b16 %v2192_v20 }
 0x374   :  { %v2976_v25 = vpop.permute.xlu2 %1043  ;;  %v578_v60 = vpop.permute.xlu1 %577 }
 0x375   :  { %v448_v27 = vpop.permute.xlu0 %447  ;;  %v1062_v14 = vsel %vm474_vm3, %v2976_v25, 0  ;;  %v574_v25 = vpack.c.b16 %v571_v22, %v571_v22 }
 0x376   :  { %481 = vmatpush.bf16.msra.mxu2 %v450_v24  ;;  %989 = vmatpush.bf16.msrb.mxu1 %v948_v16  ;;  %v399_v24 = vunpack.c.l.b16 %v2165_v13 }
 0x379   :  { %2264 = vmatmul.msk.bf16.vlgmr.msrb.gmra.mxu1 %vm464_vm4, %v2516_v29 }
 0x37a   :  { %482 = vmatpush.bf16.msra.mxu2 %v448_v27  ;;  %1231 = vmatpush.bf16.msra.mxu1 %v1224_v39  ;;  %v2515_v27 = vld [vmem:[%s3445_s2 + $0x1c] sm:$0xff] }
 0x37c   :  { %v1126_v35 = vpop.permute.xlu2 %1125  ;;  %v828_v4 = vpop.permute.xlu1 %827 }
 0x37d   :  { %v1144_v37 = vsel %vm474_vm3, %v1126_v35, 0  ;;  %v442_v38 = vpop.permute.xlu0 %441 }
 0x37e   :  { %483 = vmatpush.bf16.msra.mxu2 %v446_v30  ;;  %1146 = vmatpush.bf16.msra.mxu0 %v1144_v37  ;;  %v2228_v30 = vld [vmem:[%s3445_s2 + $0x24] sm:$0xf] }
 0x37f   :  { %1232 = vmatpush.bf16.msra.mxu1 %v2523_v45  ;;  %v773_v32 = vunpack.c.l.b16 %v2228_v30 }
 0x381   :  { %v776_v33 = vpack.c.b16 %v773_v32, %v773_v32 }
 0x382   :  { %484 = vmatpush.bf16.msra.mxu2 %v444_v1 }
 0x383   :  { %1233 = vmatpush.bf16.msra.mxu1 %v2522_v47 }
 0x384   :  { %v822_v9 = vpop.permute.xlu1 %821 }
 0x385   :  { %v586_v52 = vpop.permute.xlu0 %585 }
 0x386   :  { %485 = vmatpush.bf16.msra.mxu2 %v442_v38 }
 0x389   :  { %2174 = vmatmul.msk.bf16.vlgmr.msra.gmra.mxu2 %vm464_vm4, %v2505_v53  ;;  %2265 = vmatmul.msk.bf16.gmra.mxu1 %vm464_vm4, %v2517_v54 }
 0x38a   :  { %610 = vmatpush.bf16.msrb.mxu2 %v608_v55 }
 0x38d   :  { %v580_v56 = vpop.permute.xlu0 %579 }
 0x38e   :  { %611 = vmatpush.bf16.msrb.mxu2 %v2948_v26 }
 0x392   :  { %612 = vmatpush.bf16.msrb.mxu2 %v586_v52 }
 0x395   :  { %v830_v62 = vpop.permute.xlu0 %829 }
 0x396   :  { %613 = vmatpush.bf16.msrb.mxu2 %v584_v61  ;;  %v848_v1 = vsel %vm474_vm3, %v830_v62, 0 }
 0x399   :  { %2175 = vmatmul.msk.bf16.gmra.mxu2 %vm464_vm4, %v2506_v0  ;;  %2266 = vmatmul.msk.bf16.gmra.mxu1 %vm464_vm4, %v946_v50 }
 0x39a   :  { %614 = vmatpush.bf16.msrb.mxu2 %v2952_v18  ;;  %v402_v18 = vpack.c.b16 %v399_v24, %v399_v24 }
 0x39d   :  { %v824_v7 = vpop.permute.xlu0 %823 }
 0x39e   :  { %615 = vmatpush.bf16.msrb.mxu2 %v580_v56  ;;  %v2271_v56 = vld [vmem:[%s3445_s2 + $0x4c] sm:$0xf] }
 0x39f   :  { %v1025_v61 = vunpack.c.l.b16 %v2271_v56 }
 0x3a1   :  { %v1028_v50 = vpack.c.b16 %v1025_v61, %v1025_v61 }
 0x3a2   :  { %616 = vmatpush.bf16.msrb.mxu2 %v578_v60 }
 0x3a5   :  { %v818_v26 = vpop.permute.xlu0 %817 }
 0x3a6   :  { %617 = vmatpush.bf16.msrb.mxu2 %v2956_v48  ;;  %v2507_v48 = vld [vmem:[%s3443_s1 + $0x28] sm:$0xff] }
 0x3a9   :  { %2176 = vmatmul.msk.bf16.gmra.mxu2 %vm464_vm4, %v402_v18  ;;  %2311 = vmatmul.msk.bf16.vlgmr.msra.gmra.mxu1 %vm136_vm1, %v2733_v31  ;;  %v816_v31 = vpop.permute.xlu1 %815 }
 0x3aa   :  { %850 = vmatpush.bf16.msra.mxu2 %v848_v1 }
 0x3ad   :  { %v1040_v8 = vpop.permute.xlu0 %1039 }
 0x3ae   :  { %851 = vmatpush.bf16.msra.mxu2 %v828_v4 }
 0x3b1   :  { %v1042_v16 = vpop.permute.xlu1 %1041 }
 0x3b2   :  { %852 = vmatpush.bf16.msra.mxu2 %v2959_v51 }
 0x3b5   :  { %v1124_v10 = vpop.permute.xlu0 %1123 }
 0x3b6   :  { %853 = vmatpush.bf16.msra.mxu2 %v824_v7  ;;  %1147 = vmatpush.bf16.msra.mxu0 %v1124_v10 }
 0x3b9   :  { %2201 = vmatmul.msk.bf16.vlgmr.msrb.gmra.mxu2 %vm464_vm4, %v2507_v48  ;;  %2312 = vmatmul.msk.bf16.gmra.mxu1 %vm136_vm1, %v2739_v40  ;;  %v2512_v40 = vld [vmem:[%s3445_s2] sm:$0xff] }
 0x3ba   :  { %854 = vmatpush.bf16.msra.mxu2 %v822_v9  ;;  %2248 = vmatmul.msk.bf16.vlgmr.msrb.gmra.mxu0 %vm464_vm4, %v2512_v40  ;;  %v2565_v48 = vld [vmem:[%s3447_s9] ss:$0 sm:$0xff] }
 0x3bd   :  { %v1122_v51 = vpop.permute.xlu0 %1121 }
 0x3be   :  { %855 = vmatpush.bf16.msra.mxu2 %v2963_v2  ;;  %1148 = vmatpush.bf16.msra.mxu0 %v1122_v51  ;;  %v2508_v2 = vld [vmem:[%s3443_s1 + $0x30] sm:$0xff] }
 0x3c2   :  { %856 = vmatpush.bf16.msra.mxu2 %v818_v26 }
 0x3c5   :  { %v1120_v17 = vpop.permute.xlu0 %1119 }
 0x3c6   :  { %857 = vmatpush.bf16.msra.mxu2 %v816_v31  ;;  %1149 = vmatpush.bf16.msra.mxu0 %v1120_v17 }
 0x3c9   :  { %2202 = vmatmul.msk.bf16.gmra.mxu2 %vm464_vm4, %v2508_v2  ;;  %2313 = vmatmul.msk.bf16.gmra.mxu1 %vm136_vm1, %v2745_v49  ;;  %v1030_v49 = vpop.permute.xlu2 %1029 }
 0x3ca   :  { %1064 = vmatpush.bf16.msrb.mxu2 %v1062_v14 }
 0x3ce   :  { %1065 = vmatpush.bf16.msrb.mxu2 %v1042_v16 }
 0x3d2   :  { %1066 = vmatpush.bf16.msrb.mxu2 %v1040_v8 }
 0x3d6   :  { %1067 = vmatpush.bf16.msrb.mxu2 %v2967_v5  ;;  %v2513_v5 = vld [vmem:[%s3445_s2 + $0x8] sm:$0xff] }
 0x3d7   :  { %2249 = vmatmul.msk.bf16.gmra.mxu0 %vm464_vm4, %v2513_v5 }
 0x3d9   :  { %2203 = vmatmul.msk.bf16.gmra.mxu2 %vm464_vm4, %v574_v25  ;;  %2314 = vmatmul.msk.bf16.gmra.mxu1 %vm136_vm1, %v2751_v58  ;;  %v757_v58 = vld [vmem:[%s3445_s2 + $0x10] sm:$0xf] }
 0x3da   :  { %1068 = vmatpush.bf16.msrb.mxu2 %v2970_v11  ;;  %v2514_v11 = vld [vmem:[%s3445_s2 + $0x14] sm:$0xff] }
 0x3de   :  { %1069 = vmatpush.bf16.msrb.mxu2 %v2972_v15  ;;  %v882_v15 = vunpack.c.l.b16 %v757_v58 }
 0x3e2   :  { %1070 = vmatpush.bf16.msrb.mxu2 %v2974_v19  ;;  %v885_v19 = vpack.c.b16 %v882_v15, %v882_v15 }
 0x3e6   :  { %1071 = vmatpush.bf16.msrb.mxu2 %v1030_v49 }
 0x3e7   :  { %2250 = vmatmul.msk.bf16.gmra.mxu0 %vm464_vm4, %v885_v19 }
 0x3e9   :  { %2237 = vmatmul.msk.bf16.vlgmr.msra.gmra.mxu2 %vm464_vm4, %v2514_v11  ;;  %2315 = vmatmul.msk.bf16.gmra.mxu1 %vm136_vm1, %v2757_v3 }
 0x3f6   :  { %v3070_v29 = vpop.f32.mrf.mxu1 }
 0x3f9   :  { %2238 = vmatmul.msk.bf16.gmra.mxu2 %vm464_vm4, %v2515_v27  ;;  %2316 = vmatmul.msk.bf16.gmra.mxu1 %vm136_vm1, %v2763_v12  ;;  %v2518_v12 = vld [vmem:[%s3445_s2 + $0x3c] sm:$0xff] }
 0x3fe   :  { %v3075_v3 = vpop.f32.mrf.mxu1 }
 0x406   :  { %v3080_v34 = vpop.f32.mrf.mxu1 }
 0x409   :  { %2239 = vmatmul.msk.bf16.gmra.mxu2 %vm464_vm4, %v776_v33  ;;  %2317 = vmatmul.msk.bf16.gmra.mxu1 %vm136_vm1, %v2769_v21  ;;  %v2519_v21 = vld [vmem:[%s3445_s2 + $0x44] sm:$0xff] }
 0x40c   :  { %v487_v35 = vpop.f32.mrf.mxu2 }
 0x40d   :  { %v543_v7 = vadd.f32 %v2840_v23, %v487_v35 }
 0x40e   :  { %v3085_v37 = vpop.f32.mrf.mxu1 }
 0x414   :  { %v489_v38 = vpop.f32.mrf.mxu2 }
 0x415   :  { %v545_v9 = vadd.f32 %v2842_v41, %v489_v38 }
 0x416   :  { %v3090_v39 = vpop.f32.mrf.mxu1 }
 0x419   :  { %2280 = vmatmul.msk.bf16.vlgmr.msrb.gmra.mxu2 %vm464_vm4, %v2518_v12  ;;  %2318 = vmatmul.msk.bf16.gmra.mxu1 %vm136_vm1, %v2774_v28 }
 0x41c   :  { %v492_v45 = vpop.f32.mrf.mxu2 }
 0x41d   :  { %v548_v17 = vadd.f32 %v2846_v42, %v492_v45 }
 0x41e   :  { %v1003_v46 = vpop.f32.mrf.mxu1 }
 0x424   :  { %v494_v47 = vpop.f32.mrf.mxu2 }
 0x425   :  { %v550_v42 = vadd.f32 %v2848_v43, %v494_v47 }
 0x426   :  { %v1235_v52 = vpop.f32.mrf.mxu1 }
 0x427   :  { %v1274_v54 = vpack.c.bf16 %v1235_v52, %v1235_v52 }
 0x429   :  { %2281 = vmatmul.msk.bf16.gmra.mxu2 %vm464_vm4, %v2519_v21  ;;  %v1332_v59 = vunpack.c.l.b16 %v1274_v54 }
 0x42c   :  { %v497_v53 = vpop.f32.mrf.mxu2 }
 0x42d   :  { %v553_v54 = vadd.f32 %v2852_v44, %v497_v53 }
 0x42e   :  { %v1237_v55 = vpop.f32.mrf.mxu1 }
 0x42f   :  { %v1275_v57 = vpack.c.bf16 %v1237_v55, %v1237_v55 }
 0x431   :  { %v1333_v28 = vunpack.c.l.b16 %v1275_v57 }
 0x433   :  { %v3102_v62 = vpack.c.b16 %v1333_v28, %v1332_v59 }
 0x434   :  { %v499_v0 = vpop.f32.mrf.mxu2 }
 0x436   :  { %v1240_v60 = vpop.f32.mrf.mxu1 }
 0x437   :  { %v1276_v24 = vpack.c.bf16 %v1240_v60, %v1240_v60  ;;  %v914_v22 = vpop.f32.mrf.mxu0 }
 0x439   :  { %2282 = vmatmul.msk.bf16.gmra.mxu2 %vm464_vm4, %v1028_v50  ;;  %v1334_v4 = vunpack.c.l.b16 %v1276_v24 }
 0x43c   :  { %v619_v13 = vpop.f32.mrf.mxu2 }
 0x43d   :  { %v633_v1 = vadd.f32 %v619_v13, %v543_v7 }
 0x43e   :  { %v1242_v26 = vpop.f32.mrf.mxu1 }
 0x43f   :  { %v1277_v18 = vpack.c.bf16 %v1242_v26, %v1242_v26  ;;  %v640_v23 = vadd.f32 %v2565_v48, %v633_v1  ;;  %v3116_v12 = vpop.f32.mrf.mxu0 }
 0x441   :  { %v1335_v8 = vunpack.c.l.b16 %v1277_v18  ;;  %v650_v40 = vmul.f32 0.01, %v640_v23  ;;  %vm645_vm1 = vcmp.gt.f32.partialorder %v640_v23, 0.0 }
 0x443   :  { %v3107_v10 = vpack.c.b16 %v1335_v8, %v1334_v4  ;;  %v655_v15 = vsel %vm645_vm1, %v640_v23, %v650_v40  ;;  %vm1948_vm1 = vcmask 261120  }
 0x444   :  { %v621_v31 = vpop.f32.mrf.mxu2 }
 0x445   :  { %v634_v51 = vadd.f32 %v621_v31, %v545_v9 }
 0x446   :  { %v1245_v14 = vpop.f32.mrf.mxu1 }
 0x447   :  { %v641_v16 = vadd.f32 %v2565_v48, %v634_v51  ;;  %v1278_v41 = vpack.c.bf16 %v1245_v14, %v1245_v14 }
 0x449   :  { %v651_v2 = vmul.f32 0.01, %v641_v16  ;;  %vm646_vm0 = vcmp.gt.f32.partialorder %v641_v16, 0.0  ;;  %v1336_v19 = vunpack.c.l.b16 %v1278_v41 }
 0x44b   :  { %v656_v5 = vsel %vm646_vm0, %v641_v16, %v651_v2  ;;  %vm1946_vm0 = vcmask 130048  }
 0x44c   :  { %v624_v20 = vpop.f32.mrf.mxu2  ;;  %v660_v32 = vmax.f32 %v655_v15, %v656_v5 }
 0x44d   :  { %v635_v25 = vadd.f32 %v624_v20, %v548_v17 }
 0x44e   :  { %v1247_v49 = vpop.f32.mrf.mxu1 }
 0x44f   :  { %v642_v11 = vadd.f32 %v2565_v48, %v635_v25  ;;  %v1279_v58 = vpack.c.bf16 %v1247_v49, %v1247_v49 }
 0x451   :  { %vm647_vm5 = vcmp.gt.f32.partialorder %v642_v11, 0.0  ;;  %v652_v27 = vmul.f32 0.01, %v642_v11  ;;  %v1337_v30 = vunpack.c.l.b16 %v1279_v58 }
 0x453   :  { %v657_v33 = vsel %vm647_vm5, %v642_v11, %v652_v27  ;;  %v3114_v35 = vpack.c.b16 %v1337_v30, %v1336_v19  ;;  %vm1979_vm5 = vcmask 392192  }
 0x454   :  { %v626_v38 = vpop.f32.mrf.mxu2  ;;  %v661_v45 = vmax.f32 %v660_v32, %v657_v33  ;;  %v919_v28 = vpop.f32.mrf.mxu0 }
 0x455   :  { %v636_v46 = vadd.f32 %v626_v38, %v550_v42 }
 0x456   :  { %v1250_v21 = vpop.f32.mrf.mxu1 }
 0x457   :  { %v643_v52 = vadd.f32 %v2565_v48, %v636_v46  ;;  %v1280_v57 = vpack.c.bf16 %v1250_v21, %v1250_v21 }
 0x459   :  { %v653_v55 = vmul.f32 0.01, %v643_v52  ;;  %vm648_vm6 = vcmp.gt.f32.partialorder %v643_v52, 0.0  ;;  %v1338_v50 = vunpack.c.l.b16 %v1280_v57 }
 0x45b   :  { %v658_v0 = vsel %vm648_vm6, %v643_v52, %v653_v55  ;;  %vm2033_vm6 = vcmask 523264  }
 0x45c   :  { %v629_v56 = vpop.f32.mrf.mxu2  ;;  %v662_v13 = vmax.f32 %v661_v45, %v658_v0  ;;  %v921_v53 = vpop.f32.mrf.mxu0 }
 0x45d   :  { %v637_v59 = vadd.f32 %v629_v56, %v553_v54 }
 0x45e   :  { %v1252_v61 = vpop.f32.mrf.mxu1 }
 0x45f   :  { %v644_v43 = vadd.f32 %v2565_v48, %v637_v59  ;;  %v1281_v47 = vpack.c.bf16 %v1252_v61, %v1252_v61 }
 0x461   :  { %vm649_vm7 = vcmp.gt.f32.partialorder %v644_v43, 0.0  ;;  %v654_v60 = vmul.f32 0.01, %v644_v43  ;;  %v1339_v7 = vunpack.c.l.b16 %v1281_v47 }
 0x463   :  { %v3119_v24 = vpack.c.b16 %v1339_v7, %v1338_v50  ;;  %v659_v1 = vsel %vm649_vm7, %v644_v43, %v654_v60  ;;  %vm2078_vm7 = vcmask 7168  }
 0x464   :  { %v631_v26 = vpop.f32.mrf.mxu2  ;;  %v3121_v44 = vmax.f32 %v662_v13, %v659_v1  ;;  %v924_v48 = vpop.f32.mrf.mxu0 }
 0x465   :  { %1361 = vrot.lane.b32.xlu1 %v3119_v24, %s2573_s22 }
 0x466   :  { %v1255_v18 = vpop.f32.mrf.mxu1 }
 0x467   :  { %v1282_v8 = vpack.c.bf16 %v1255_v18, %v1255_v18  ;;  %v1114_v18 = vpop.permute.xlu2 %1113 }
 0x469   :  { %v1340_v14 = vunpack.c.l.b16 %v1282_v8 }
 0x46c   :  { %v859_v4 = vpop.f32.mrf.mxu2  ;;  %v926_v2 = vpop.f32.mrf.mxu0 }
 0x46d   :  { %v915_v9 = vadd.f32 %v914_v22, %v859_v4  ;;  %v2526_v2 = vld [vmem:[%s3448_s3 + $0x8] sm:$0xff] }
 0x46e   :  { %v1257_v31 = vpop.f32.mrf.mxu1 }
 0x46f   :  { %v1283_v51 = vpack.c.bf16 %v1257_v31, %v1257_v31  ;;  %v1005_v59 = vadd.f32 %v3070_v29, %v915_v9  ;;  %v2525_v31 = vld [vmem:[%s3448_s3] sm:$0xff] }
 0x471   :  { %v1341_v16 = vunpack.c.l.b16 %v1283_v51 }
 0x473   :  { %v3125_v23 = vpack.c.b16 %v1341_v16, %v1340_v14 }
 0x474   :  { %v861_v17 = vpop.f32.mrf.mxu2 }
 0x475   :  { %1363 = vrot.lane.b32.xlu1 %v3125_v23, %s2573_s22  ;;  %v917_v0 = vadd.f32 %v3116_v12, %v861_v17 }
 0x476   :  { %v1260_v40 = vpop.f32.mrf.mxu1 }
 0x477   :  { %v1284_v41 = vpack.c.bf16 %v1260_v40, %v1260_v40  ;;  %v1006_v29 = vadd.f32 %v3075_v3, %v917_v0  ;;  %v2531_v0 = vld [vmem:[%s3448_s3 + $0x30] sm:$0xff] }
 0x479   :  { %v1342_v11 = vunpack.c.l.b16 %v1284_v41  ;;  %v2528_v41 = vld [vmem:[%s3448_s3 + $0x18] sm:$0xff] }
 0x47c   :  { %v864_v20 = vpop.f32.mrf.mxu2 }
 0x47d   :  { %v920_v25 = vadd.f32 %v919_v28, %v864_v20 }
 0x47e   :  { %v1262_v49 = vpop.f32.mrf.mxu1 }
 0x47f   :  { %v1285_v5 = vpack.c.bf16 %v1262_v49, %v1262_v49  ;;  %v1007_v12 = vadd.f32 %v3080_v34, %v920_v25 }
 0x481   :  { %v1343_v22 = vunpack.c.l.b16 %v1285_v5 }
 0x483   :  { %v3129_v58 = vpack.c.b16 %v1343_v22, %v1342_v11  ;;  %v2527_v22 = vld [vmem:[%s3448_s3 + $0x10] sm:$0xff] }
 0x484   :  { %v866_v15 = vpop.f32.mrf.mxu2 }
 0x485   :  { %v922_v19 = vadd.f32 %v921_v53, %v866_v15  ;;  %1365 = vrot.lane.b32.xlu1 %v3129_v58, %s2573_s22 }
 0x486   :  { %v1265_v27 = vpop.f32.mrf.mxu1 }
 0x487   :  { %v1286_v32 = vpack.c.bf16 %v1265_v27, %v1265_v27 }
 0x489   :  { %v1344_v45 = vunpack.c.l.b16 %v1286_v32 }
 0x48c   :  { %v869_v30 = vpop.f32.mrf.mxu2 }
 0x48d   :  { %v925_v42 = vadd.f32 %v924_v48, %v869_v30  ;;  %v2529_v30 = vld [vmem:[%s3448_s3 + $0x20] sm:$0xff] }
 0x48e   :  { %v1267_v33 = vpop.f32.mrf.mxu1 }
 0x48f   :  { %v1287_v38 = vpack.c.bf16 %v1267_v33, %v1267_v33 }
 0x491   :  { %v1345_v46 = vunpack.c.l.b16 %v1287_v38  ;;  %v2287_v38 = vld [vmem:[%s3445_s2 + $0x60] sm:$0xf] }
 0x493   :  { %v3133_v21 = vpack.c.b16 %v1345_v46, %v1344_v45  ;;  %v1107_v46 = vunpack.c.l.b16 %v2287_v38 }
 0x494   :  { %v871_v52 = vpop.f32.mrf.mxu2 }
 0x495   :  { %1506 = vrot.lane.b32.xlu2 %v3133_v21, %s2572_s7  ;;  %1367 = vrot.lane.b32.xlu1 %v3133_v21, %s2573_s22 }
 0x496   :  { %v1270_v54 = vpop.f32.mrf.mxu1 }
 0x497   :  { %v1288_v55 = vpack.c.bf16 %v1270_v54, %v1270_v54  ;;  %v1110_v54 = vpack.c.b16 %v1107_v46, %v1107_v46 }
 0x499   :  { %v1346_v56 = vunpack.c.l.b16 %v1288_v55 }
 0x49b   :  { %v3139_v57 = vpack.c.b16 %v1346_v56, %v1346_v56  ;;  %v2530_v56 = vld [vmem:[%s3448_s3 + $0x28] sm:$0xff] }
 0x49c   :  { %v1073_v28 = vpop.f32.mrf.mxu2 }
 0x49d   :  { %v3142_v61 = vadd.f32 %v1073_v28, %v1005_v59  ;;  %1589 = vrot.lane.b32.xlu2 %v3125_v23, %s2574_s23  ;;  %1359 = vrot.lane.b32.xlu1 %v3114_v35, %s2573_s22  ;;  %v1446_v43 = vsel %vm474_vm3, %v3139_v57, 0 }
 0x49e   :  { %1369 = vrot.lane.b32.xlu0 %v3139_v57, %s2573_s22  ;;  %v1272_v47 = vpop.f32.mrf.mxu1  ;;  %1448 = vmatpush.bf16.msra.mxu2 %v1446_v43 }
 0x4a2   :  { %1449 = vmatpush.bf16.msra.mxu2 %v3133_v21 }
 0x4a4   :  { %v1075_v50 = vpop.f32.mrf.mxu2 }
 0x4a5   :  { %v3155_v60 = vadd.f32 %v1075_v50, %v1006_v29  ;;  %1357 = vrot.lane.b32.xlu1 %v3107_v10, %s2573_s22  ;;  %1595 = vrot.lane.b32.xlu2 %v3139_v57, %s2574_s23  ;;  %v2534_v29 = vld [vmem:[%s3448_s3 + $0x48] sm:$0xff] }
 0x4a6   :  { %1117 = vrot.lane.b32.xlu0 %v2858_v63, %s2575_s24  ;;  %1450 = vmatpush.bf16.msra.mxu2 %v3129_v58  ;;  %v1008_v63 = vadd.f32 %v3085_v37, %v922_v19  ;;  %v2521_v19 = vld [vmem:[%s3445_s2 + $0x58] sm:$0xff] }
 0x4aa   :  { %1451 = vmatpush.bf16.msra.mxu2 %v3125_v23 }
 0x4ac   :  { %v1078_v7 = vpop.f32.mrf.mxu2 }
 0x4ad   :  { %v3166_v3 = vadd.f32 %v1078_v7, %v1007_v12  ;;  %1111 = vrot.lane.b32.xlu1 %v2882_v36, %s2575_s24  ;;  %1500 = vrot.lane.b32.xlu2 %v3119_v24, %s2572_s7 }
 0x4ae   :  { %1115 = vrot.lane.b32.xlu0 %v2862_v6, %s2575_s24  ;;  %1452 = vmatpush.bf16.msra.mxu2 %v3119_v24  ;;  %v1009_v6 = vadd.f32 %v3090_v39, %v925_v42 }
 0x4b2   :  { %1453 = vmatpush.bf16.msra.mxu2 %v3114_v35 }
 0x4b4   :  { %v1080_v13 = vpop.f32.mrf.mxu2 }
 0x4b5   :  { %v3177_v34 = vadd.f32 %v1080_v13, %v1008_v63  ;;  %1593 = vrot.lane.b32.xlu1 %v3133_v21, %s2574_s23  ;;  %1583 = vrot.lane.b32.xlu2 %v3107_v10, %s2574_s23 }
 0x4b6   :  { %1355 = vrot.lane.b32.xlu0 %v3102_v62, %s2573_s22  ;;  %1454 = vmatpush.bf16.msra.mxu2 %v3107_v10  ;;  %s2576_s22 = smov 32  }
 0x4ba   :  { %1455 = vmatpush.bf16.msra.mxu2 %v3102_v62 }
 0x4bc   :  { %v1083_v36 = vpop.f32.mrf.mxu2 }
 0x4bd   :  { %v3188_v37 = vadd.f32 %v1083_v36, %v1009_v6  ;;  %1504 = vrot.lane.b32.xlu1 %v3129_v58, %s2572_s7  ;;  %1494 = vrot.lane.b32.xlu2 %v3102_v62, %s2572_s7 }
 0x4be   :  { %1591 = vrot.lane.b32.xlu0 %v3129_v58, %s2574_s23  ;;  %2352 = vmatmul.msk.bf16.vlgmr.msra.gmra.mxu2 %vm464_vm4, %v2525_v31  ;;  %v2533_v31 = vld [vmem:[%s3448_s3 + $0x40] sm:$0xff] }
 0x4c4   :  { %v1085_v1 = vpop.f32.mrf.mxu2 }
 0x4c5   :  { %1587 = vrot.lane.b32.xlu1 %v3119_v24, %s2574_s23  ;;  %1680 = vrot.lane.b32.xlu2 %v3133_v21, %s2575_s24 }
 0x4c6   :  { %1502 = vrot.lane.b32.xlu0 %v3125_v23, %s2572_s7 }
 0x4cd   :  { %1498 = vrot.lane.b32.xlu1 %v3114_v35, %s2572_s7  ;;  %1854 = vrot.lane.b32.xlu2 %v3133_v21, %s2576_s22 }
 0x4ce   :  { %1508 = vrot.lane.b32.xlu0 %v3139_v57, %s2572_s7  ;;  %2353 = vmatmul.msk.bf16.gmra.mxu2 %vm464_vm4, %v2526_v2  ;;  %v2543_v2 = vld [vmem:[%s3448_s3 + $0x90] sm:$0xff] }
 0x4d5   :  { %1581 = vrot.lane.b32.xlu1 %v3102_v62, %s2574_s23  ;;  %1852 = vrot.lane.b32.xlu2 %v3129_v58, %s2576_s22 }
 0x4d6   :  { %1585 = vrot.lane.b32.xlu0 %v3114_v35, %s2574_s23 }
 0x4d7   :  { %v1362_v39 = vpop.permute.xlu1 %1361 }
 0x4dd   :  { %1678 = vrot.lane.b32.xlu1 %v3129_v58, %s2575_s24  ;;  %1850 = vrot.lane.b32.xlu2 %v3125_v23, %s2576_s22 }
 0x4de   :  { %1496 = vrot.lane.b32.xlu0 %v3107_v10, %s2572_s7  ;;  %2354 = vmatmul.msk.bf16.gmra.mxu2 %vm464_vm4, %v2527_v22  ;;  %v2567_v22 = vld [vmem:[%s3447_s9 + $0x1] ss:$0 sm:$0xff] }
 0x4e5   :  { %1767 = vrot.lane.b32.xlu1 %v3133_v21, %s2577_s20  ;;  %1848 = vrot.lane.b32.xlu2 %v3119_v24, %s2576_s22 }
 0x4e6   :  { %1676 = vrot.lane.b32.xlu0 %v3125_v23, %s2575_s24 }
 0x4e7   :  { %v1364_v26 = vpop.permute.xlu1 %1363 }
 0x4ed   :  { %1765 = vrot.lane.b32.xlu1 %v3129_v58, %s2577_s20  ;;  %1846 = vrot.lane.b32.xlu2 %v3114_v35, %s2576_s22 }
 0x4ee   :  { %1674 = vrot.lane.b32.xlu0 %v3119_v24, %s2575_s24 }
 0x4ef   :  { %v3248_v8 = vpop.permute.xlu2 %1506 }
 0x4f5   :  { %1856 = vrot.lane.b32.xlu1 %v3139_v57, %s2576_s22  ;;  %1844 = vrot.lane.b32.xlu2 %v3107_v10, %s2576_s22 }
 0x4f6   :  { %1682 = vrot.lane.b32.xlu0 %v3139_v57, %s2575_s24 }
 0x4f7   :  { %v1366_v53 = vpop.permute.xlu1 %1365  ;;  %v1590_v51 = vpop.permute.xlu2 %1589 }
 0x4fd   :  { %1763 = vrot.lane.b32.xlu1 %v3125_v23, %s2577_s20  ;;  %1755 = vrot.lane.b32.xlu2 %v3102_v62, %s2577_s20 }
 0x4fe   :  { %1769 = vrot.lane.b32.xlu0 %v3139_v57, %s2577_s20 }
 0x4ff   :  { %v1596_v16 = vpop.permute.xlu2 %1595 }
 0x500   :  { %v1614_v25 = vsel %vm474_vm3, %v1596_v16, 0 }
 0x505   :  { %1761 = vrot.lane.b32.xlu1 %v3119_v24, %s2577_s20 }
 0x506   :  { %1672 = vrot.lane.b32.xlu0 %v3114_v35, %s2575_s24 }
 0x507   :  { %v1368_v4 = vpop.permute.xlu1 %1367 }
 0x50d   :  { %1759 = vrot.lane.b32.xlu1 %v3114_v35, %s2577_s20 }
 0x50e   :  { %1670 = vrot.lane.b32.xlu0 %v3107_v10, %s2575_s24 }
 0x50f   :  { %v1360_v9 = vpop.permute.xlu1 %1359 }
 0x510   :  { %v1370_v48 = vpop.permute.xlu0 %1369 }
 0x511   :  { %v1388_v24 = vsel %vm474_vm3, %v1370_v48, 0 }
 0x512   :  { %1390 = vmatpush.bf16.msra.mxu3 %v1388_v24 }
 0x515   :  { %1842 = vrot.lane.b32.xlu1 %v3102_v62, %s2576_s22 }
 0x516   :  { %1668 = vrot.lane.b32.xlu0 %v3102_v62, %s2575_s24  ;;  %1391 = vmatpush.bf16.msra.mxu3 %v1368_v4  ;;  %v1501_v62 = vpop.permute.xlu2 %1500 }
 0x517   :  { %v1358_v35 = vpop.permute.xlu1 %1357 }
 0x518   :  { %v1118_v14 = vpop.permute.xlu0 %1117 }
 0x519   :  { %1150 = vmatpush.bf16.msra.mxu0 %v1118_v14 }
 0x51a   :  { %1392 = vmatpush.bf16.msra.mxu3 %v1366_v53  ;;  %v2535_v53 = vld [vmem:[%s3448_s3 + $0x50] sm:$0xff] }
 0x51e   :  { %1757 = vrot.lane.b32.xlu0 %v3107_v10, %s2577_s20  ;;  %1393 = vmatpush.bf16.msra.mxu3 %v1364_v26  ;;  %v2520_v10 = vld [vmem:[%s3445_s2 + $0x50] sm:$0xff]  ;;  %v1584_v5 = vpop.permute.xlu2 %1583 }
 0x51f   :  { %v1112_v23 = vpop.permute.xlu1 %1111 }
 0x520   :  { %v1116_v17 = vpop.permute.xlu0 %1115 }
 0x521   :  { %1151 = vmatpush.bf16.msra.mxu0 %v1116_v17  ;;  %v2537_v17 = vld [vmem:[%s3448_s3 + $0x60] sm:$0xff] }
 0x522   :  { %1394 = vmatpush.bf16.msra.mxu3 %v1362_v39  ;;  %v2532_v39 = vld [vmem:[%s3448_s3 + $0x38] sm:$0xff] }
 0x525   :  { %1152 = vmatpush.bf16.msra.mxu0 %v1114_v18 }
 0x526   :  { %1395 = vmatpush.bf16.msra.mxu3 %v1360_v9  ;;  %v1495_v27 = vpop.permute.xlu2 %1494 }
 0x527   :  { %v1594_v40 = vpop.permute.xlu1 %1593 }
 0x528   :  { %v1356_v20 = vpop.permute.xlu0 %1355 }
 0x529   :  { %1153 = vmatpush.bf16.msra.mxu0 %v1112_v23 }
 0x52a   :  { %1396 = vmatpush.bf16.msra.mxu3 %v1358_v35 }
 0x52c   :  { %2296 = vmatmul.msk.bf16.vlgmr.msra.gmra.mxu0 %vm464_vm4, %v2520_v10  ;;  %v2538_v10 = vld [vmem:[%s3448_s3 + $0x68] sm:$0xff] }
 0x52e   :  { %1397 = vmatpush.bf16.msra.mxu3 %v1356_v20  ;;  %v1681_v45 = vpop.permute.xlu2 %1680  ;;  %v2540_v20 = vld [vmem:[%s3448_s3 + $0x78] sm:$0xff] }
 0x52f   :  { %v1505_v49 = vpop.permute.xlu1 %1504 }
 0x530   :  { %v1592_v11 = vpop.permute.xlu0 %1591 }
 0x531   :  { %2337 = vmatmul.msk.bf16.vlgmr.msra.gmra.mxu3 %vm464_vm4, %v2528_v41  ;;  %v2544_v41 = vld [vmem:[%s3448_s3 + $0x98] sm:$0xff] }
 0x532   :  { %1616 = vmatpush.bf16.msrb.mxu3 %v1614_v25  ;;  %v2541_v25 = vld [vmem:[%s3448_s3 + $0x80] sm:$0xff] }
 0x536   :  { %1617 = vmatpush.bf16.msrb.mxu3 %v1594_v40  ;;  %v1855_v55 = vpop.permute.xlu2 %1854 }
 0x537   :  { %v1588_v58 = vpop.permute.xlu1 %1587 }
 0x538   :  { %v1503_v15 = vpop.permute.xlu0 %1502 }
 0x53a   :  { %1618 = vmatpush.bf16.msrb.mxu3 %v1592_v11 }
 0x53c   :  { %2297 = vmatmul.msk.bf16.gmra.mxu0 %vm464_vm4, %v2521_v19 }
 0x53e   :  { %1619 = vmatpush.bf16.msrb.mxu3 %v1590_v51  ;;  %v1853_v43 = vpop.permute.xlu2 %1852  ;;  %v2536_v51 = vld [vmem:[%s3448_s3 + $0x58] sm:$0xff] }
 0x53f   :  { %v1499_v32 = vpop.permute.xlu1 %1498 }
 0x540   :  { %v1509_v42 = vpop.permute.xlu0 %1508 }
 0x541   :  { %v1527_v33 = vsel %vm474_vm3, %v1509_v42, 0  ;;  %2338 = vmatmul.msk.bf16.gmra.mxu3 %vm464_vm4, %v2529_v30  ;;  %v1457_v19 = vpop.f32.mrf.mxu2 }
 0x542   :  { %1620 = vmatpush.bf16.msrb.mxu3 %v1588_v58  ;;  %1529 = vmatpush.bf16.msrb.mxu0 %v1527_v33  ;;  %v2545_v58 = vld [vmem:[%s3448_s3 + $0xa0] sm:$0xff]  ;;  %v2542_v33 = vld [vmem:[%s3448_s3 + $0x88] sm:$0xff] }
 0x546   :  { %1530 = vmatpush.bf16.msrb.mxu0 %v3248_v8  ;;  %v1851_v7 = vpop.permute.xlu2 %1850 }
 0x547   :  { %v1582_v21 = vpop.permute.xlu1 %1581 }
 0x548   :  { %v1586_v52 = vpop.permute.xlu0 %1585 }
 0x549   :  { %1621 = vmatpush.bf16.msrb.mxu3 %v1586_v52 }
 0x54a   :  { %1531 = vmatpush.bf16.msrb.mxu0 %v1505_v49  ;;  %v2539_v49 = vld [vmem:[%s3448_s3 + $0x70] sm:$0xff]  ;;  %s2578_s3 = smov 16  }
 0x54c   :  { %2298 = vmatmul.msk.bf16.gmra.mxu0 %vm464_vm4, %v1110_v54 }
 0x54d   :  { %1622 = vmatpush.bf16.msrb.mxu3 %v1584_v5 }
 0x54e   :  { %1532 = vmatpush.bf16.msrb.mxu0 %v1503_v15  ;;  %v1849_v1 = vpop.permute.xlu2 %1848 }
 0x54f   :  { %v1679_v57 = vpop.permute.xlu1 %1678 }
 0x550   :  { %v1497_v59 = vpop.permute.xlu0 %1496 }
 0x551   :  { %1623 = vmatpush.bf16.msrb.mxu3 %v1582_v21 }
 0x552   :  { %1533 = vmatpush.bf16.msrb.mxu0 %v1501_v62  ;;  %2339 = vmatmul.msk.bf16.gmra.mxu3 %vm464_vm4, %v2530_v56 }
 0x556   :  { %1534 = vmatpush.bf16.msrb.mxu0 %v1499_v32  ;;  %v1847_v8 = vpop.permute.xlu2 %1846 }
 0x557   :  { %v1768_v28 = vpop.permute.xlu1 %1767 }
 0x558   :  { %v1677_v47 = vpop.permute.xlu0 %1676 }
 0x55a   :  { %1535 = vmatpush.bf16.msrb.mxu0 %v1497_v59 }
 0x55e   :  { %1536 = vmatpush.bf16.msrb.mxu0 %v1495_v27  ;;  %v1845_v35 = vpop.permute.xlu2 %1844 }
 0x55f   :  { %v1766_v50 = vpop.permute.xlu1 %1765 }
 0x560   :  { %v1675_v12 = vpop.permute.xlu0 %1674 }
 0x561   :  { %2373 = vmatmul.msk.bf16.vlgmr.msrb.gmra.mxu0 %vm464_vm4, %v2531_v0 }
 0x562   :  { %2394 = vmatmul.msk.bf16.vlgmr.msrb.gmra.mxu3 %vm464_vm4, %v2534_v29 }
 0x566   :  { %v1756_v40 = vpop.permute.xlu2 %1755 }
 0x567   :  { %v1857_v63 = vpop.permute.xlu1 %1856 }
 0x568   :  { %v1875_v13 = vsel %vm474_vm3, %v1857_v63, 0  ;;  %v1683_v6 = vpop.permute.xlu0 %1682 }
 0x569   :  { %v1701_v36 = vsel %vm474_vm3, %v1683_v6, 0  ;;  %1877 = vmatpush.bf16.msra.mxu3 %v1875_v13 }
 0x56a   :  { %1703 = vmatpush.bf16.msrb.mxu2 %v1701_v36 }
 0x56d   :  { %1878 = vmatpush.bf16.msra.mxu3 %v1855_v55  ;;  %v1459_v55 = vpop.f32.mrf.mxu2 }
 0x56e   :  { %1704 = vmatpush.bf16.msrb.mxu2 %v1681_v45 }
 0x56f   :  { %v1764_v26 = vpop.permute.xlu1 %1763 }
 0x570   :  { %v1770_v18 = vpop.permute.xlu0 %1769 }
 0x571   :  { %v1788_v4 = vsel %vm474_vm3, %v1770_v18, 0  ;;  %1879 = vmatpush.bf16.msra.mxu3 %v1853_v43  ;;  %2374 = vmatmul.msk.bf16.gmra.mxu0 %vm464_vm4, %v2532_v39 }
 0x572   :  { %1705 = vmatpush.bf16.msrb.mxu2 %v1679_v57  ;;  %1790 = vmatpush.bf16.msra.mxu0 %v1788_v4 }
 0x573   :  { %2395 = vmatmul.msk.bf16.gmra.mxu3 %vm464_vm4, %v2535_v53 }
 0x575   :  { %1880 = vmatpush.bf16.msra.mxu3 %v1851_v7 }
 0x576   :  { %1706 = vmatpush.bf16.msrb.mxu2 %v1677_v47  ;;  %1791 = vmatpush.bf16.msra.mxu0 %v1768_v28 }
 0x577   :  { %v1762_v9 = vpop.permute.xlu1 %1761 }
 0x578   :  { %v1673_v48 = vpop.permute.xlu0 %1672 }
 0x579   :  { %1881 = vmatpush.bf16.msra.mxu3 %v1849_v1 }
 0x57a   :  { %1707 = vmatpush.bf16.msrb.mxu2 %v1675_v12  ;;  %1792 = vmatpush.bf16.msra.mxu0 %v1766_v50 }
 0x57d   :  { %1882 = vmatpush.bf16.msra.mxu3 %v1847_v8 }
 0x57e   :  { %1708 = vmatpush.bf16.msrb.mxu2 %v1673_v48  ;;  %1793 = vmatpush.bf16.msra.mxu0 %v1764_v26 }
 0x57f   :  { %v1760_v24 = vpop.permute.xlu1 %1759 }
 0x580   :  { %v1671_v14 = vpop.permute.xlu0 %1670 }
 0x581   :  { %1883 = vmatpush.bf16.msra.mxu3 %v1845_v35  ;;  %2375 = vmatmul.msk.bf16.gmra.mxu0 %vm464_vm4, %v2533_v31 }
 0x582   :  { %1709 = vmatpush.bf16.msrb.mxu2 %v1671_v14  ;;  %1794 = vmatpush.bf16.msra.mxu0 %v1762_v9 }
 0x583   :  { %2396 = vmatmul.msk.bf16.gmra.mxu3 %vm464_vm4, %v2536_v51  ;;  %v1462_v51 = vpop.f32.mrf.mxu2 }
 0x586   :  { %1795 = vmatpush.bf16.msra.mxu0 %v1760_v24 }
 0x587   :  { %v1843_v16 = vpop.permute.xlu1 %1842 }
 0x588   :  { %v1669_v23 = vpop.permute.xlu0 %1668  ;;  %1884 = vmatpush.bf16.msra.mxu3 %v1843_v16 }
 0x589   :  { %1710 = vmatpush.bf16.msrb.mxu2 %v1669_v23 }
 0x58b   :  { %v1464_v23 = vpop.f32.mrf.mxu2 }
 0x58c   :  { %2415 = vmatmul.msk.bf16.vlgmr.msrb.gmra.mxu2 %vm464_vm4, %v2537_v17 }
 0x590   :  { %v1758_v62 = vpop.permute.xlu0 %1757 }
 0x591   :  { %1796 = vmatpush.bf16.msra.mxu0 %v1758_v62 }
 0x593   :  { %2457 = vmatmul.msk.bf16.vlgmr.msra.gmra.mxu3 %vm464_vm4, %v2543_v2  ;;  %v1467_v62 = vpop.f32.mrf.mxu2 }
 0x595   :  { %1797 = vmatpush.bf16.msra.mxu0 %v1756_v40 }
 0x598   :  { %2436 = vmatmul.msk.bf16.vlgmr.msra.gmra.mxu0 %vm464_vm4, %v2540_v20 }
 0x59c   :  { %2416 = vmatmul.msk.bf16.gmra.mxu2 %vm464_vm4, %v2538_v10 }
 0x5a3   :  { %2458 = vmatmul.msk.bf16.gmra.mxu3 %vm464_vm4, %v2544_v41  ;;  %v1469_v41 = vpop.f32.mrf.mxu2 }
 0x5a8   :  { %2437 = vmatmul.msk.bf16.gmra.mxu0 %vm464_vm4, %v2541_v25 }
 0x5a9   :  { %v1155_v5 = vpop.f32.mrf.mxu0 }
 0x5aa   :  { %v1169_v11 = vadd.f32 %v1155_v5, %v3142_v61 }
 0x5ac   :  { %2417 = vmatmul.msk.bf16.gmra.mxu2 %vm464_vm4, %v2539_v49  ;;  %v1176_v15 = vadd.f32 %v2567_v22, %v1169_v11 }
 0x5ae   :  { %v1186_v32 = vmul.f32 0.01, %v1176_v15  ;;  %vm1181_vm8 = vcmp.gt.f32.partialorder %v1176_v15, 0.0 }
 0x5b0   :  { %v1191_v46 = vsel %vm1181_vm8, %v1176_v15, %v1186_v32  ;;  %vm2080_vm8 = vcmask 121856  }
 0x5b1   :  { %v1157_v27 = vpop.f32.mrf.mxu0 }
 0x5b2   :  { %v1170_v30 = vadd.f32 %v1157_v27, %v3155_v60  ;;  %v3386_v27 = vld [vmem:[%s3447_s9 + $0x2] ss:$0 sm:$0xff] }
 0x5b3   :  { %2459 = vmatmul.msk.bf16.gmra.mxu3 %vm464_vm4, %v2545_v58 }
 0x5b4   :  { %v1177_v42 = vadd.f32 %v2567_v22, %v1170_v30  ;;  %v1399_v61 = vpop.f32.mrf.mxu3 }
 0x5b5   :  { %v1458_v38 = vadd.f32 %v1457_v19, %v1399_v61 }
 0x5b6   :  { %vm1182_vm9 = vcmp.gt.f32.partialorder %v1177_v42, 0.0  ;;  %v1187_v45 = vmul.f32 0.01, %v1177_v42 }
 0x5b8   :  { %v1192_v21 = vsel %vm1182_vm9, %v1177_v42, %v1187_v45  ;;  %2438 = vmatmul.msk.bf16.gmra.mxu0 %vm464_vm4, %v2542_v33  ;;  %vm2082_vm9 = vcmask 236544  }
 0x5b9   :  { %v1196_v52 = vmax.f32 %v1191_v46, %v1192_v21  ;;  %v1160_v54 = vpop.f32.mrf.mxu0 }
 0x5ba   :  { %v1171_v60 = vadd.f32 %v1160_v54, %v3166_v3 }
 0x5bc   :  { %v1178_v56 = vadd.f32 %v2567_v22, %v1171_v60  ;;  %v1401_v57 = vpop.f32.mrf.mxu3 }
 0x5bd   :  { %v1460_v59 = vadd.f32 %v1459_v55, %v1401_v57 }
 0x5be   :  { %vm1183_vm10 = vcmp.gt.f32.partialorder %v1178_v56, 0.0  ;;  %v1188_v28 = vmul.f32 0.01, %v1178_v56 }
 0x5c0   :  { %v1193_v43 = vsel %vm1183_vm10, %v1178_v56, %v1188_v28  ;;  %vm2084_vm10 = vcmask 351232  }
 0x5c1   :  { %v1162_v47 = vpop.f32.mrf.mxu0  ;;  %v1197_v0 = vmax.f32 %v1196_v52, %v1193_v43 }
 0x5c2   :  { %v1172_v29 = vadd.f32 %v1162_v47, %v3177_v34 }
 0x5c4   :  { %v1179_v50 = vadd.f32 %v2567_v22, %v1172_v29  ;;  %v1404_v12 = vpop.f32.mrf.mxu3 }
 0x5c5   :  { %v1463_v61 = vadd.f32 %v1462_v51, %v1404_v12 }
 0x5c6   :  { %vm1184_vm11 = vcmp.gt.f32.partialorder %v1179_v50, 0.0  ;;  %v1189_v7 = vmul.f32 0.01, %v1179_v50 }
 0x5c8   :  { %v1194_v63 = vsel %vm1184_vm11, %v1179_v50, %v1189_v7  ;;  %vm2086_vm11 = vcmask 875520  }
 0x5c9   :  { %v1165_v13 = vpop.f32.mrf.mxu0  ;;  %v1198_v6 = vmax.f32 %v1197_v0, %v1194_v63 }
 0x5ca   :  { %v1173_v3 = vadd.f32 %v1165_v13, %v3188_v37 }
 0x5cc   :  { %v1180_v36 = vadd.f32 %v2567_v22, %v1173_v3  ;;  %v1406_v1 = vpop.f32.mrf.mxu3 }
 0x5cd   :  { %v1465_v28 = vadd.f32 %v1464_v23, %v1406_v1 }
 0x5ce   :  { %vm1185_vm12 = vcmp.gt.f32.partialorder %v1180_v36, 0.0  ;;  %v1190_v39 = vmul.f32 0.01, %v1180_v36 }
 0x5d0   :  { %v1195_v26 = vsel %vm1185_vm12, %v1180_v36, %v1190_v39 }
 0x5d1   :  { %v3371_v53 = vmax.f32 %v1198_v6, %v1195_v26  ;;  %v1167_v18 = vpop.f32.mrf.mxu0 }
 0x5d3   :  { %1939 = vrot.lane.b32.xlu0 %v3371_v53, %s2578_s3 }
 0x5d5   :  { %v3374_v34 = vpop.f32.mrf.mxu3 }
 0x5d6   :  { %v1468_v26 = vadd.f32 %v1467_v62, %v3374_v34 }
 0x5db   :  { %2065 = vrot.lane.b32.xlu0 %v3121_v44, %s2579_s5 }
 0x5dd   :  { %v3377_v4 = vpop.f32.mrf.mxu3 }
 0x5de   :  { %v1538_v8 = vpop.f32.mrf.mxu0 }
 0x5df   :  { %v1553_v37 = vadd.f32 %v1538_v8, %v1458_v38 }
 0x5e5   :  { %v1625_v9 = vpop.f32.mrf.mxu3 }
 0x5e6   :  { %v1640_v48 = vadd.f32 %v1625_v9, %v1553_v37  ;;  %v1540_v31 = vpop.f32.mrf.mxu0 }
 0x5e7   :  { %v1554_v24 = vadd.f32 %v1540_v31, %v1460_v59 }
 0x5ed   :  { %v1627_v35 = vpop.f32.mrf.mxu3 }
 0x5ee   :  { %v1641_v14 = vadd.f32 %v1627_v35, %v1554_v24  ;;  %v1543_v16 = vpop.f32.mrf.mxu0  ;;  %v2548_v24 = vld [vmem:[%s3449_s10 + $0x10] sm:$0xff] }
 0x5ef   :  { %v1555_v21 = vadd.f32 %v1543_v16, %v1463_v61  ;;  %1988 = vmatpush.bf16.msrb.mxu1 %v2548_v24 }
 0x5f6   :  { %v1630_v17 = vpop.f32.mrf.mxu3  ;;  %v1545_v2 = vpop.f32.mrf.mxu0 }
 0x5f7   :  { %v1642_v54 = vadd.f32 %v1630_v17, %v1555_v21  ;;  %v1556_v7 = vadd.f32 %v1545_v2, %v1465_v28  ;;  %v1470_v17 = vadd.f32 %v1469_v41, %v3377_v4  ;;  %v2550_v21 = vld [vmem:[%s3451_s12 + $0x8] sm:$0xff] }
 0x5fe   :  { %v1632_v40 = vpop.f32.mrf.mxu3  ;;  %v1548_v20 = vpop.f32.mrf.mxu0 }
 0x5ff   :  { %v1643_v13 = vadd.f32 %v1632_v40, %v1556_v7 }
 0x606   :  { %v1635_v10 = vpop.f32.mrf.mxu3  ;;  %v3379_v25 = vpop.f32.mrf.mxu0 }
 0x60e   :  { %v3381_v49 = vpop.f32.mrf.mxu3 }
 0x60f   :  { %v1712_v5 = vpop.f32.mrf.mxu2 }
 0x610   :  { %v1727_v11 = vadd.f32 %v1712_v5, %v1640_v48  ;;  %v1557_v48 = vadd.f32 %v1548_v20, %v1468_v26 }
 0x612   :  { %v1644_v51 = vadd.f32 %v1635_v10, %v1557_v48  ;;  %v1558_v10 = vadd.f32 %v3379_v25, %v1470_v17 }
 0x615   :  { %v1799_v22 = vpop.f32.mrf.mxu0 }
 0x616   :  { %v1814_v58 = vadd.f32 %v1799_v22, %v1727_v11  ;;  %v1886_v15 = vpop.f32.mrf.mxu3  ;;  %v1645_v22 = vadd.f32 %v3381_v49, %v1558_v10  ;;  %v2546_v49 = vld [vmem:[%s3449_s10] sm:$0xff] }
 0x617   :  { %v1714_v19 = vpop.f32.mrf.mxu2 }
 0x618   :  { %v1901_v30 = vadd.f32 %v1886_v15, %v1814_v58  ;;  %v1728_v32 = vadd.f32 %v1714_v19, %v1641_v14  ;;  %v2547_v14 = vld [vmem:[%s3449_s10 + $0x8] sm:$0xff] }
 0x619   :  { %1989 = vmatpush.bf16.msrb.mxu1 %v2547_v14 }
 0x61a   :  { %v1909_v33 = vadd.f32 %v3386_v27, %v1901_v30 }
 0x61c   :  { %v1921_v60 = vmul.f32 0.01, %v1909_v33  ;;  %vm1915_vm13 = vcmp.gt.f32.partialorder %v1909_v33, 0.0 }
 0x61d   :  { %v1801_v42 = vpop.f32.mrf.mxu0  ;;  %1990 = vmatpush.bf16.msrb.mxu1 %v2546_v49 }
 0x61e   :  { %v1815_v38 = vadd.f32 %v1801_v42, %v1728_v32  ;;  %v1888_v45 = vpop.f32.mrf.mxu3  ;;  %v1927_v43 = vsel %vm1915_vm13, %v1909_v33, %v1921_v60 }
 0x61f   :  { %v1717_v46 = vpop.f32.mrf.mxu2 }
 0x620   :  { %v1902_v52 = vadd.f32 %v1888_v45, %v1815_v38  ;;  %v1729_v57 = vadd.f32 %v1717_v46, %v1642_v54  ;;  %v2551_v46 = vld [vmem:[%s3451_s12 + $0x10] sm:$0xff] }
 0x622   :  { %v1910_v55 = vadd.f32 %v3386_v27, %v1902_v52 }
 0x624   :  { %vm1916_vm14 = vcmp.gt.f32.partialorder %v1910_v55, 0.0  ;;  %v1922_v56 = vmul.f32 0.01, %v1910_v55 }
 0x625   :  { %v1804_v59 = vpop.f32.mrf.mxu0 }
 0x626   :  { %v1928_v47 = vsel %vm1916_vm14, %v1910_v55, %v1922_v56  ;;  %v1816_v0 = vadd.f32 %v1804_v59, %v1729_v57  ;;  %v1891_v29 = vpop.f32.mrf.mxu3  ;;  %v2549_v56 = vld [vmem:[%s3451_s12] sm:$0xff] }
 0x627   :  { %v1933_v50 = vmax.f32 %v1927_v43, %v1928_v47  ;;  %v1719_v12 = vpop.f32.mrf.mxu2  ;;  %v2568_v57 = vld [vmem:[%s3450_s11] ss:$0 sm:$0xff]  ;;  %v21_v47 = vstv %s3454_s15 }
 0x628   :  { %v1903_v63 = vadd.f32 %v1891_v29, %v1816_v0  ;;  %v1730_v36 = vadd.f32 %v1719_v12, %v1643_v13  ;;  %22 = vst [vmem:[#allocation2] sm:$0x1] %v21_v47  ;;  %v2569_v0 = vld [vmem:[%s3452_s13] ss:$0 sm:$0xff] }
 0x629   :  { %v2570_v12 = vld [vmem:[%s3453_s14] ss:$0 sm:$0xff] }
 0x62a   :  { %v1911_v6 = vadd.f32 %v3386_v27, %v1903_v63 }
 0x62c   :  { %vm1917_vm15 = vcmp.gt.f32.partialorder %v1911_v6, 0.0  ;;  %v1923_v3 = vmul.f32 0.01, %v1911_v6 }
 0x62d   :  { %v1806_v39 = vpop.f32.mrf.mxu0 }
 0x62e   :  { %v1929_v18 = vsel %vm1917_vm15, %v1911_v6, %v1923_v3  ;;  %v1817_v8 = vadd.f32 %v1806_v39, %v1730_v36  ;;  %v1893_v1 = vpop.f32.mrf.mxu3 }
 0x62f   :  { %v1934_v37 = vmax.f32 %v1933_v50, %v1929_v18  ;;  %v1722_v9 = vpop.f32.mrf.mxu2  ;;  %v2571_v39 = vld [vmem:[#allocation2] ss:$0 sm:$0xff] }
 0x630   :  { %v1904_v31 = vadd.f32 %v1893_v1, %v1817_v8  ;;  %v1731_v16 = vadd.f32 %v1722_v9, %v1644_v51 }
 0x632   :  { %v1912_v35 = vadd.f32 %v3386_v27, %v1904_v31 }
 0x634   :  { %vm1918_vm2 = vcmp.gt.f32.partialorder %v1912_v35, 0.0  ;;  %v1924_v34 = vmul.f32 0.01, %v1912_v35 }
 0x635   :  { %v1809_v23 = vpop.f32.mrf.mxu0 }
 0x636   :  { %v1930_v2 = vsel %vm1918_vm2, %v1912_v35, %v1924_v34  ;;  %v1818_v62 = vadd.f32 %v1809_v23, %v1731_v16  ;;  %v1896_v40 = vpop.f32.mrf.mxu3 }
 0x637   :  { %v1935_v20 = vmax.f32 %v1934_v37, %v1930_v2  ;;  %v1724_v11 = vpop.f32.mrf.mxu2 }
 0x638   :  { %v1905_v5 = vadd.f32 %v1896_v40, %v1818_v62  ;;  %v1732_v19 = vadd.f32 %v1724_v11, %v1645_v22 }
 0x63a   :  { %v1913_v58 = vadd.f32 %v3386_v27, %v1905_v5 }
 0x63c   :  { %vm1919_vm3 = vcmp.gt.f32.partialorder %v1913_v58, 0.0  ;;  %v1925_v15 = vmul.f32 0.01, %v1913_v58 }
 0x63d   :  { %v1811_v30 = vpop.f32.mrf.mxu0 }
 0x63e   :  { %v1819_v32 = vadd.f32 %v1811_v30, %v1732_v19  ;;  %v1931_v42 = vsel %vm1919_vm3, %v1913_v58, %v1925_v15  ;;  %v1898_v4 = vpop.f32.mrf.mxu3 }
 0x63f   :  { %v1936_v41 = vmax.f32 %v1935_v20, %v1931_v42 }
 0x640   :  { %v1906_v61 = vadd.f32 %v1898_v4, %v1819_v32 }
 0x642   :  { %v1914_v33 = vadd.f32 %v3386_v27, %v1906_v61  ;;  %v2552_v27 = vld [vmem:[%s3451_s12 + $0x18] sm:$0xff] }
 0x643   :  { %2041 = vmatpush.bf16.msra.mxu2 %v2552_v27 }
 0x644   :  { %vm1920_vm4 = vcmp.gt.f32.partialorder %v1914_v33, 0.0  ;;  %v1926_v38 = vmul.f32 0.01, %v1914_v33 }
 0x646   :  { %v1932_v25 = vsel %vm1920_vm4, %v1914_v33, %v1926_v38 }
 0x647   :  { %v1937_v45 = vmax.f32 %v1936_v41, %v1932_v25  ;;  %2042 = vmatpush.bf16.msra.mxu2 %v2551_v46 }
 0x649   :  { %2071 = vrot.lane.b32.xlu0 %v1937_v45, %s2580_s30  ;;  %1943 = vrot.lane.b32.xlu1 %v1937_v45, %s2576_s22 }
 0x64b   :  { %2043 = vmatpush.bf16.msra.mxu2 %v2550_v21 }
 0x64f   :  { %2044 = vmatpush.bf16.msra.mxu2 %v2549_v56 }
 0x651   :  { %2068 = vrot.lane.b32.xlu1 %v3371_v53, %s2581_s4  ;;  %v1940_v53 = vpop.permute.xlu0 %1939 }
 0x652   :  { %v1947_v52 = vsel %vm1946_vm0, %v3121_v44, %v1940_v53 }
 0x659   :  { %v2066_v3 = vpop.permute.xlu0 %2065 }
 0x6bb   :  { %v1944_v54 = vpop.permute.xlu1 %1943  ;;  %v2072_v1 = vpop.permute.xlu0 %2071 }
 0x6bc   :  { %v1949_v60 = vsel %vm1948_vm1, %v1947_v52, %v1944_v54 }
 0x6bd   :  { %v1950_v55 = vpack.c.bf16 %v1949_v60, %v1949_v60 }
 0x6bf   :  { %2472 = vmatmul.msk.bf16.vlgmr.msrb.gmra.mxu1 %vm1979_vm5, %v1950_v55 }
 0x6c3   :  { %v2069_v36 = vpop.permute.xlu1 %2068 }
 0x73c   :  { %v1992_v59 = vpop.f32.mrf.mxu1 }
 0x73d   :  { %v1993_v28 = vadd.f32 %v2568_v57, %v1992_v59 }
 0x73f   :  { %v1996_v43 = vpack.c.bf16 %v1993_v28, %v1993_v28  ;;  %2075 = vrot.lane.b32.xlu1 %v1993_v28, %s2582_s21 }
 0x741   :  { %2489 = vmatmul.msk.bf16.vlgmr.msra.gmra.mxu2 %vm2033_vm6, %v1996_v43 }
 0x744   :  { %v1994_v44 = vpop.f32.mrf.mxu1 }
 0x7b1   :  { %v2076_v9 = vpop.permute.xlu1 %2075 }
 0x7c4   :  { %v2046_v29 = vpop.f32.mrf.mxu2 }
 0x7c5   :  { %v2047_v50 = vadd.f32 %v2569_v0, %v2046_v29 }
 0x7c7   :  { %v2050_v7 = vmax.f32 %v2047_v50, 0.0 }
 0x7c9   :  { %v2055_v63 = vmul.f32 %v2570_v12, %v2050_v7 }
 0x7cb   :  { %v2056_v13 = vsel %vm1948_vm1, %v2055_v63, 0.0 }
 0x7cc   :  { %v2048_v6 = vpop.f32.mrf.mxu2  ;;  %2057 = vadd.xlane.f32.xlu2 %v2056_v13 }
 0x83f   :  { %v2058_v26 = vpop.xlane.xlu2 %2057 }
 0x840   :  { %v2063_v18 = vadd.f32 %v2571_v39, %v2058_v26 }
 0x842   :  { %v2079_v8 = vsel %vm2078_vm7, %v2063_v18, %v2066_v3 }
 0x843   :  { %v2081_v37 = vsel %vm2080_vm8, %v2079_v8, %v2069_v36 }
 0x844   :  { %v2083_v48 = vsel %vm2082_vm9, %v2081_v37, %v2072_v1 }
 0x845   :  { %v2085_v31 = vsel %vm2084_vm10, %v2083_v48, %v2076_v9 }
 0x846   :  { %v2087_v24 = vsel %vm2086_vm11, %v2085_v31, 0.0 }
 0x847   :  { %2088 = vst [vmem:[%s3455_s16] sm:$0xff] %v2087_v24 }

</bundles_post_ra>
